<compile_context>
chip_gen: v7x
topology: tpu7x:2x2x1
jax: 0.10.0
libtpu: 0.0.40
codegen_flags: <defaults>
</compile_context>

<pallas_src>
import functools

import jax
import jax.numpy as jnp
import numpy as np
from jax.experimental import pallas as pl
from jax.experimental.pallas import tpu as pltpu


# ---------------------------------------------------------------------------
# VMEM budgeting helpers (account for (sublane, lane) padding of real buffers).
# ---------------------------------------------------------------------------
def _round_up(x: int, m: int) -> int:
    return ((x + m - 1) // m) * m


def _sublane_multiple(dtype) -> int:
    itemsize = jnp.dtype(dtype).itemsize
    return {4: 8, 2: 16, 1: 32}.get(itemsize, 8)


def _padded_vmem_bytes(shape, dtype) -> int:
    """Bytes a VMEM buffer of `shape` really occupies: minor dim padded to a
    multiple of 128 lanes, second-minor to the dtype's sublane multiple."""
    itemsize = jnp.dtype(dtype).itemsize
    if len(shape) == 0:
        return itemsize
    if len(shape) == 1:
        return _round_up(shape[0], 128) * itemsize
    lead = 1
    for d in shape[:-2]:
        lead *= d
    sub = _sublane_multiple(dtype)
    return lead * _round_up(shape[-2], sub) * _round_up(shape[-1], 128) * itemsize


@functools.lru_cache(maxsize=None)
def _vmem_budget_bytes() -> int:
    """Per-core scratch budget derived from the actual chip (v7x: 64 MiB)."""
    cap = 64 * 1024 * 1024  # conservative default = smallest per-core VMEM (v7x)
    try:
        cap = int(getattr(pltpu.get_tpu_info(), "vmem_capacity_bytes", cap))
    except Exception:
        pass
    budget = min(int(cap * 0.65), cap - (16 << 20))
    return max(budget, 24 << 20)


def _compute_footprint(in_rows, wp, cin, m, kflat, cout_pad, dtype, n_in_bufs):
    """Padded VMEM bytes for one pipelined step (inputs, weights, outputs,
    patch/accumulator temporaries)."""
    fp = n_in_bufs * _padded_vmem_bytes((in_rows, wp, cin), dtype)      # input tiles
    fp += 2 * _padded_vmem_bytes((kflat, cout_pad), dtype)              # weights (dbl-buf)
    fp += 2 * _padded_vmem_bytes((m, cout_pad), dtype)                  # output blocks
    fp += _padded_vmem_bytes((m, kflat), dtype)                         # patch value
    fp += _padded_vmem_bytes((m, cout_pad), jnp.float32)                # f32 accumulator
    return fp


def _select_plan(hp, wp, cin, ho, wo, kflat, cout_pad, stride, ksize_h, dtype):
    """Pick ("whole", ho) when the full padded image fits the budget (auto
    pipelining, cross-image prefetch for free); otherwise a row-tile height
    with M = tile_ho*wo ideally in [256, 2048] and a multiple of 128."""
    budget = _vmem_budget_bytes()
    usable = int(budget * 0.85)
    sub = _sublane_multiple(dtype)

    if _compute_footprint(hp, wp, cin, ho * wo, kflat, cout_pad, dtype, 2) <= usable:
        return "whole", ho, budget

    feasible = []
    for th in range(1, ho):
        if ho % th:
            continue
        m = th * wo
        if m % sub:
            continue
        tile_hin = (th - 1) * stride + ksize_h
        if _compute_footprint(tile_hin, wp, cin, m, kflat, cout_pad, dtype, 2) <= usable:
            feasible.append(th)

    if not feasible:
        aligned = [th for th in range(1, ho) if ho % th == 0 and (th * wo) % sub == 0]
        if aligned:
            return "rows", min(aligned), budget
        return "whole", ho, budget  # degenerate fallback

    pick = [th for th in feasible if th * wo <= 2048 and (th * wo) % 128 == 0]
    if not pick:
        pick = [th for th in feasible if th * wo <= 2048]
    return "rows", (max(pick) if pick else min(feasible)), budget


# ---------------------------------------------------------------------------
# Shared conv compute: taps read straight from the ref, no scratch round-trip.
# ---------------------------------------------------------------------------
def _conv_accumulate(read_window, w_ref, ksize_h, ksize_w, stride,
                     out_h, out_w, cin, fold_k):
    """read_window(kh, rows, kw, cols) -> (rows, cols, cin) value read from the
    input ref.  Returns the f32 (out_h*out_w, Cout_pad) result."""
    m = out_h * out_w

    def tap(kh, kw):
        if stride == 1:
            v = read_window(kh, out_h, kw, out_w)
        else:
            v = read_window(kh, (out_h - 1) * stride + 1,
                            kw, (out_w - 1) * stride + 1)
            v = jax.lax.slice(v, (0, 0, 0), v.shape, (stride, stride, 1))
        return v.reshape(m, cin)

    if fold_k:
        # Small Cin: fold KH*KW*Cin into one MXU contraction (value-ized patch,
        # no VMEM scratch store/reload).
        taps = [tap(kh, kw) for kh in range(ksize_h) for kw in range(ksize_w)]
        patch = taps[0] if len(taps) == 1 else jnp.concatenate(taps, axis=-1)
        return jnp.dot(patch, w_ref[...], preferred_element_type=jnp.float32)

    # Large Cin: per-tap K=Cin matmuls accumulating in f32 (MRB-friendly on v7x).
    acc = None
    for kh in range(ksize_h):
        for kw in range(ksize_w):
            idx = kh * ksize_w + kw
            part = jnp.dot(tap(kh, kw), w_ref[pl.ds(idx * cin, cin), :],
                           preferred_element_type=jnp.float32)
            acc = part if acc is None else acc + part
    return acc


def _make_whole_image_kernel(ksize_h, ksize_w, stride, out_h, out_w, cin, fold_k):
    """Plan A: input block = whole padded image, auto-pipelined by BlockSpec."""
    def kernel(x_ref, w_ref, o_ref):
        # x_ref: (1, Hp, Wp, Cin) VMEM, w_ref: (KH*KW*Cin, Cout_pad),
        # o_ref: (1, Ho*Wo, Cout_pad) lane-dense output slab.
        def read_window(kh, rows, kw, cols):
            return x_ref[0, pl.ds(kh, rows), pl.ds(kw, cols), :]

        acc = _conv_accumulate(read_window, w_ref, ksize_h, ksize_w, stride,
                               out_h, out_w, cin, fold_k)
        o_ref[0] = acc.astype(o_ref.dtype)
    return kernel


def _make_row_tile_kernel(ksize_h, ksize_w, stride, tile_ho, tile_hin, wo, cin, fold_k):
    """Plan B: large images; manual double-buffered halo DMA, input in HBM."""
    def kernel(x_hbm, w_ref, o_ref, xbuf, sem):
        # x_hbm: (N, Hp, Wp, Cin) in HBM (pl.ANY); xbuf: (2, tile_hin, Wp, Cin).
        b = pl.program_id(0)
        t = pl.program_id(1)
        nt = pl.num_programs(1)

        def row_copy(tt, slot_):
            return pltpu.make_async_copy(
                x_hbm.at[b, pl.ds(tt * tile_ho * stride, tile_hin)],
                xbuf.at[slot_],
                sem.at[slot_],
            )

        # Each image's first tile starts its own copy: every (b, t=0) step is
        # self-contained, so any megacore split of the parallel batch axis is
        # safe (no cross-image semaphore chaining).
        @pl.when(t == 0)
        def _():
            row_copy(0, 0).start()

        # Prefetch the next row tile of the same image into the other slot so
        # its HBM->VMEM copy overlaps with this tile's compute.
        @pl.when(t + 1 < nt)
        def _():
            row_copy(t + 1, (t + 1) % 2).start()

        slot = t % 2
        row_copy(t, slot).wait()

        def read_window(kh, rows, kw, cols):
            return xbuf[slot, pl.ds(kh, rows), pl.ds(kw, cols), :]

        acc = _conv_accumulate(read_window, w_ref, ksize_h, ksize_w, stride,
                               tile_ho, wo, cin, fold_k)
        o_ref[0] = acc.astype(o_ref.dtype)
    return kernel


# ---------------------------------------------------------------------------
# Wrapper: ReflectionPad2d(k//2) + Conv2d(no bias), NCHW in / NCHW out.
# ---------------------------------------------------------------------------
@functools.partial(jax.jit, static_argnames=("stride", "force_row_tile_ho"))
def conv_layer_forward(x_nchw, weight_oihw, *, stride: int = 1,
                       force_row_tile_ho=None):
    n, cin, h, w = x_nchw.shape
    cout, cin_w, ksize_h, ksize_w = weight_oihw.shape
    assert cin == cin_w, (cin, cin_w)
    pad = ksize_h // 2  # ConvLayer uses a scalar (square) kernel_size

    # ---- wrapper glue: layout + reflection padding (pure data movement) ----
    x_nhwc = jnp.transpose(x_nchw, (0, 2, 3, 1))
    x_pad = jnp.pad(x_nhwc, ((0, 0), (pad, pad), (pad, pad), (0, 0)), mode="reflect")
    hp, wp = h + 2 * pad, w + 2 * pad
    ho = (hp - ksize_h) // stride + 1
    wo = (wp - ksize_w) // stride + 1

    # Weights flattened to (KH*KW*Cin, Cout) in tap order, padded to a
    # lane-dense Cout multiple of 128 (zero columns are sliced away afterwards).
    kflat = ksize_h * ksize_w * cin
    cout_pad = _round_up(cout, 128)
    w_flat = jnp.transpose(weight_oihw, (2, 3, 1, 0)).reshape(kflat, cout)
    if cout_pad != cout:
        w_flat = jnp.pad(w_flat, ((0, 0), (0, cout_pad - cout)))

    fold_k = cin < 128  # folded-K im2col only pays off for small Cin
    plan, tile_ho, vmem_limit = _select_plan(
        hp, wp, cin, ho, wo, kflat, cout_pad, stride, ksize_h, x_nchw.dtype)
    if force_row_tile_ho is not None:  # testing hook for the large-image path
        tile_ho = int(force_row_tile_ho)
        sub = _sublane_multiple(x_nchw.dtype)
        assert ho % tile_ho == 0 and ((tile_ho * wo) % sub == 0 or tile_ho == ho)
        plan = "rows"

    if plan == "whole":
        # Small/medium images: whole padded image per step, auto-pipelined
        # (cross-image prefetch handled by Pallas; megacore-safe "parallel").
        kernel = _make_whole_image_kernel(ksize_h, ksize_w, stride, ho, wo, cin, fold_k)
        out_flat = pl.pallas_call(
            kernel,
            out_shape=jax.ShapeDtypeStruct((n, ho * wo, cout_pad), x_nchw.dtype),
            grid_spec=pltpu.PrefetchScalarGridSpec(
                num_scalar_prefetch=0,
                grid=(n,),
                in_specs=[
                    pl.BlockSpec((1, hp, wp, cin), lambda b: (b, 0, 0, 0)),
                    pl.BlockSpec((kflat, cout_pad), lambda b: (0, 0)),
                ],
                out_specs=pl.BlockSpec((1, ho * wo, cout_pad), lambda b: (b, 0, 0)),
            ),
            compiler_params=pltpu.CompilerParams(
                dimension_semantics=("parallel",),
                vmem_limit_bytes=vmem_limit,
            ),
        )(x_pad, w_flat)
    else:
        nt = ho // tile_ho
        tile_hin = (tile_ho - 1) * stride + ksize_h  # halo rows included
        kernel = _make_row_tile_kernel(ksize_h, ksize_w, stride,
                                       tile_ho, tile_hin, wo, cin, fold_k)
        out_flat = pl.pallas_call(
            kernel,
            out_shape=jax.ShapeDtypeStruct((n, ho * wo, cout_pad), x_nchw.dtype),
            grid_spec=pltpu.PrefetchScalarGridSpec(
                num_scalar_prefetch=0,
                grid=(n, nt),
                in_specs=[
                    pl.BlockSpec(memory_space=pl.ANY),  # padded input stays in HBM
                    pl.BlockSpec((kflat, cout_pad), lambda b, t: (0, 0)),
                ],
                out_specs=pl.BlockSpec((1, tile_ho * wo, cout_pad),
                                       lambda b, t: (b, t, 0)),
                scratch_shapes=[
                    pltpu.VMEM((2, tile_hin, wp, cin), x_nchw.dtype),  # halo tiles
                    pltpu.SemaphoreType.DMA((2,)),
                ],
            ),
            compiler_params=pltpu.CompilerParams(
                dimension_semantics=("parallel", "arbitrary"),
                vmem_limit_bytes=vmem_limit,
            ),
        )(x_pad, w_flat)

    # Wrapper-side un-flattening + Cout unpadding (free layout plumbing).
    out_nhwc = out_flat.reshape(n, ho, wo, cout_pad)[..., :cout]
    return jnp.transpose(out_nhwc, (0, 3, 1, 2))


if __name__ == "__main__":
    key = jax.random.PRNGKey(0)
    kx, kw_key = jax.random.split(key)

    N, Cin, H, W = 2, 4, 16, 16
    Cout, K, STRIDE = 8, 3, 1

    x = jax.random.normal(kx, (N, Cin, H, W), dtype=jnp.float32)
    weight = jax.random.normal(kw_key, (Cout, Cin, K, K), dtype=jnp.float32) * 0.1

    def reference(xv, wv, stride):
        p = K // 2
        xp = jnp.pad(xv, ((0, 0), (0, 0), (p, p), (p, p)), mode="reflect")
        return jax.lax.conv_general_dilated(
            xp, wv, window_strides=(stride, stride), padding="VALID",
            dimension_numbers=("NCHW", "OIHW", "NCHW"))

    ref = reference(x, weight, STRIDE)

    # 1) Default plan (whole-image, auto-pipelined).
    out = jax.block_until_ready(conv_layer_forward(x, weight, stride=STRIDE))
    assert out.shape == ref.shape == (N, Cout, H, W), (out.shape, ref.shape)
    np.testing.assert_allclose(np.asarray(out), np.asarray(ref), rtol=1e-3, atol=1e-3)

    # 2) Forced row-tile plan (the large-image manual halo-DMA path).
    out_rt = jax.block_until_ready(
        conv_layer_forward(x, weight, stride=STRIDE, force_row_tile_ho=8))
    np.testing.assert_allclose(np.asarray(out_rt), np.asarray(ref), rtol=1e-3, atol=1e-3)

    print("KERNEL_OK")
</pallas_src>

<mosaic_0001>
module attributes {stable_mosaic.version = 11 : i64} {
  func.func @kernel(%arg0: i32, %arg1: memref<1x18x18x4xf32, #tpu.memory_space<vmem>>, %arg2: memref<36x128xf32, #tpu.memory_space<vmem>>, %arg3: memref<1x256x128xf32, #tpu.memory_space<vmem>>) attributes {dimension_semantics = [#tpu.dimension_semantics<parallel>], iteration_bounds = array<i64: 2>, scalar_prefetch = 0 : i64, scratch_operands = 0 : i64, tpu.core_type = #tpu.core_type<tc>, window_params = [{transform_indices = @transform_0, window_bounds = array<i64: 1, 18, 18, 4>}, {pipeline_mode = #tpu.pipeline_mode<synchronous>, transform_indices = @transform_1, window_bounds = array<i64: 36, 128>}, {transform_indices = @transform_2, window_bounds = array<i64: 1, 256, 128>}]} {
    %c0 = arith.constant 0 : index
    %c0_0 = arith.constant 0 : index
    %c0_1 = arith.constant 0 : index
    %c0_2 = arith.constant 0 : index
    %0 = vector.load %arg1[%c0, %c0_0, %c0_1, %c0_2] : memref<1x18x18x4xf32, #tpu.memory_space<vmem>>, vector<1x16x16x4xf32>
    %1 = vector.shape_cast %0 : vector<1x16x16x4xf32> to vector<16x16x4xf32>
    %2 = vector.shape_cast %1 : vector<16x16x4xf32> to vector<256x4xf32>
    %c0_3 = arith.constant 0 : index
    %c0_4 = arith.constant 0 : index
    %c1 = arith.constant 1 : index
    %c0_5 = arith.constant 0 : index
    %3 = vector.load %arg1[%c0_3, %c0_4, %c1, %c0_5] : memref<1x18x18x4xf32, #tpu.memory_space<vmem>>, vector<1x16x16x4xf32>
    %4 = vector.shape_cast %3 : vector<1x16x16x4xf32> to vector<16x16x4xf32>
    %5 = vector.shape_cast %4 : vector<16x16x4xf32> to vector<256x4xf32>
    %c0_6 = arith.constant 0 : index
    %c0_7 = arith.constant 0 : index
    %c2 = arith.constant 2 : index
    %c0_8 = arith.constant 0 : index
    %6 = vector.load %arg1[%c0_6, %c0_7, %c2, %c0_8] : memref<1x18x18x4xf32, #tpu.memory_space<vmem>>, vector<1x16x16x4xf32>
    %7 = vector.shape_cast %6 : vector<1x16x16x4xf32> to vector<16x16x4xf32>
    %8 = vector.shape_cast %7 : vector<16x16x4xf32> to vector<256x4xf32>
    %c0_9 = arith.constant 0 : index
    %c1_10 = arith.constant 1 : index
    %c0_11 = arith.constant 0 : index
    %c0_12 = arith.constant 0 : index
    %9 = vector.load %arg1[%c0_9, %c1_10, %c0_11, %c0_12] : memref<1x18x18x4xf32, #tpu.memory_space<vmem>>, vector<1x16x16x4xf32>
    %10 = vector.shape_cast %9 : vector<1x16x16x4xf32> to vector<16x16x4xf32>
    %11 = vector.shape_cast %10 : vector<16x16x4xf32> to vector<256x4xf32>
    %c0_13 = arith.constant 0 : index
    %c1_14 = arith.constant 1 : index
    %c1_15 = arith.constant 1 : index
    %c0_16 = arith.constant 0 : index
    %12 = vector.load %arg1[%c0_13, %c1_14, %c1_15, %c0_16] : memref<1x18x18x4xf32, #tpu.memory_space<vmem>>, vector<1x16x16x4xf32>
    %13 = vector.shape_cast %12 : vector<1x16x16x4xf32> to vector<16x16x4xf32>
    %14 = vector.shape_cast %13 : vector<16x16x4xf32> to vector<256x4xf32>
    %c0_17 = arith.constant 0 : index
    %c1_18 = arith.constant 1 : index
    %c2_19 = arith.constant 2 : index
    %c0_20 = arith.constant 0 : index
    %15 = vector.load %arg1[%c0_17, %c1_18, %c2_19, %c0_20] : memref<1x18x18x4xf32, #tpu.memory_space<vmem>>, vector<1x16x16x4xf32>
    %16 = vector.shape_cast %15 : vector<1x16x16x4xf32> to vector<16x16x4xf32>
    %17 = vector.shape_cast %16 : vector<16x16x4xf32> to vector<256x4xf32>
    %c0_21 = arith.constant 0 : index
    %c2_22 = arith.constant 2 : index
    %c0_23 = arith.constant 0 : index
    %c0_24 = arith.constant 0 : index
    %18 = vector.load %arg1[%c0_21, %c2_22, %c0_23, %c0_24] : memref<1x18x18x4xf32, #tpu.memory_space<vmem>>, vector<1x16x16x4xf32>
    %19 = vector.shape_cast %18 : vector<1x16x16x4xf32> to vector<16x16x4xf32>
    %20 = vector.shape_cast %19 : vector<16x16x4xf32> to vector<256x4xf32>
    %c0_25 = arith.constant 0 : index
    %c2_26 = arith.constant 2 : index
    %c1_27 = arith.constant 1 : index
    %c0_28 = arith.constant 0 : index
    %21 = vector.load %arg1[%c0_25, %c2_26, %c1_27, %c0_28] : memref<1x18x18x4xf32, #tpu.memory_space<vmem>>, vector<1x16x16x4xf32>
    %22 = vector.shape_cast %21 : vector<1x16x16x4xf32> to vector<16x16x4xf32>
    %23 = vector.shape_cast %22 : vector<16x16x4xf32> to vector<256x4xf32>
    %c0_29 = arith.constant 0 : index
    %c2_30 = arith.constant 2 : index
    %c2_31 = arith.constant 2 : index
    %c0_32 = arith.constant 0 : index
    %24 = vector.load %arg1[%c0_29, %c2_30, %c2_31, %c0_32] : memref<1x18x18x4xf32, #tpu.memory_space<vmem>>, vector<1x16x16x4xf32>
    %25 = vector.shape_cast %24 : vector<1x16x16x4xf32> to vector<16x16x4xf32>
    %26 = vector.shape_cast %25 : vector<16x16x4xf32> to vector<256x4xf32>
    %27 = tpu.concatenate %2, %5, %8, %11, %14, %17, %20, %23, %26 in 1 : vector<256x4xf32>, vector<256x4xf32>, vector<256x4xf32>, vector<256x4xf32>, vector<256x4xf32>, vector<256x4xf32>, vector<256x4xf32>, vector<256x4xf32>, vector<256x4xf32> -> vector<256x36xf32>
    %c0_33 = arith.constant 0 : index
    %c0_34 = arith.constant 0 : index
    %28 = vector.load %arg2[%c0_33, %c0_34] : memref<36x128xf32, #tpu.memory_space<vmem>>, vector<36x128xf32>
    %cst = arith.constant dense<0.000000e+00> : vector<256x128xf32>
    %29 = tpu.matmul %27, %28, %cst {dimension_numbers = #tpu.dot_dimension_numbers<[1], [0], [0], [1], [0, 0, 1, 1], [], []>} : vector<256x36xf32>, vector<36x128xf32>, vector<256x128xf32> -> vector<256x128xf32>
    %c0_35 = arith.constant 0 : index
    %c0_36 = arith.constant 0 : index
    %c0_37 = arith.constant 0 : index
    %30 = vector.load %arg3[%c0_35, %c0_36, %c0_37] : memref<1x256x128xf32, #tpu.memory_space<vmem>>, vector<1x256x128xf32>
    %31 = vector.shape_cast %30 : vector<1x256x128xf32> to vector<256x128xf32>
    %32 = vector.shape_cast %29 : vector<256x128xf32> to vector<1x256x128xf32>
    tpu.vector_store %arg3[%c0_35, %c0_36, %c0_37], %32 {strides = array<i32>} : memref<1x256x128xf32, #tpu.memory_space<vmem>>, vector<1x256x128xf32>,
    return
  }
  func.func @transform_0(%arg0: i32) -> (i32, i32, i32, i32) {
    %c0_i32 = arith.constant 0 : i32
    %c0_i32_0 = arith.constant 0 : i32
    %c0_i32_1 = arith.constant 0 : i32
    %c0_i32_2 = arith.constant 0 : i32
    return %arg0, %c0_i32, %c0_i32_0, %c0_i32_1 : i32, i32, i32, i32
  }
  func.func @transform_1(%arg0: i32) -> (i32, i32) {
    %c0_i32 = arith.constant 0 : i32
    %c0_i32_0 = arith.constant 0 : i32
    %c0_i32_1 = arith.constant 0 : i32
    return %c0_i32, %c0_i32_0 : i32, i32
  }
  func.func @transform_2(%arg0: i32) -> (i32, i32, i32) {
    %c0_i32 = arith.constant 0 : i32
    %c0_i32_0 = arith.constant 0 : i32
    %c0_i32_1 = arith.constant 0 : i32
    return %arg0, %c0_i32, %c0_i32_0 : i32, i32, i32
  }
}

</mosaic_0001>

<bundles_post_ra>
// kernel: conv_layer_forward.1
= control target key start
LH: loop header
LB: loop body
LE: loop exit
PB: predicated region body
PF: predicated region fallthrough
CT: control target
= control target key end

     0   :  { %s2533_s9 = smov 0   ;;  %s3950_s0 = inlined_call_operand.vmem [shape: f32[2,18,18,4], index: 0, kind: input, shape index: {}]   ;;  %s3951_s1 = inlined_call_operand.vmem [shape: f32[36,128], index: 1, kind: input, shape index: {}]   ;;  %s3952_s2 = inlined_call_operand.vmem [shape: f32[2,256,128], index: 2, kind: output, shape index: {}]  }
   0x1 LB: > { %s2140_s10 = sadd.s32 4294967295, %s2508_s9   ;;  %p2144_p0 = scmp.ge.s32.totalorder %s2508_s9, 1  ;;  %s2508_s9 = sphi %s2533_s9, %s12_s9  }
   0x2   : > { %p112_p1 = scmp.lt.s32.totalorder %s2508_s9, 3 }
   0x4   : > { %p113_p2 = pnand %p2144_p0, %p112_p1 }
   0x6   : > { %116 = sbr.rel (%p113_p2) target bundleno = 858 (0x35a), region = 28 }
   0xd   : > { %p134_p3 = scmp.lt.s32.totalorder %s2140_s10, 1  ;;  %s2510_s15 = smov 4   ;;  %vm1458_vm0 = vcmask 31744   ;;  %vm1491_vm1 = vcmask 64512   ;;  %vm1824_vm2 = vcmask 1043456   ;;  %vm1524_vm3 = vcmask 97280  }
   0xe   : > { %s2511_s16 = smov 8   ;;  %s2512_s17 = smov 12   ;;  %vm1557_vm4 = vcmask 130048   ;;  %vm1590_vm5 = vcmask 162816   ;;  %vm1623_vm6 = vcmask 195584   ;;  %vm1656_vm7 = vcmask 228352  }
   0xf   : > { %s4097_s10 = smov (!%p134_p3, %s2140_s10), 1  ;;  %s2513_s18 = smov 16   ;;  %vm1689_vm8 = vcmask 261120   ;;  %vm1727_vm9 = vcmask 293888  }
  0x10   : > { %s2485_s11 = smul.u32 432, %s4097_s10  ;;  %s2514_s19 = smov 20  }
  0x11   : > { %s2515_s20 = smov 24   ;;  %s2516_s25 = smov 28  }
  0x12   : > { %s2547_s14 = scalar_lea.vmem %s3950_s0, %s2485_s11  ;;  %s2517_s4 = smov 32  }
  0x13   : > { %v2550_v0 = vld [vmem:[%s2547_s14 + $0x19] sm:$0xff]  ;;  %v176_v1 = vld [vmem:[%s2547_s14 + $0x1] sm:$0xff]  ;;  %v177_v3 = vld [vmem:[%s2547_s14 + $0x9] sm:$0xff]  ;;  %s2375_s5 = sshll.u32 %s4097_s10, 8 }
  0x14   : > { %470 = vrot.lane.b32.xlu1 %v2550_v0, %s2510_s15  ;;  %466 = vrot.lane.b32.xlu0 %v176_v1, %s2510_s15  ;;  %v2557_v2 = vld [vmem:[%s2547_s14 + $0x21] sm:$0xff]  ;;  %v2564_v4 = vld [vmem:[%s2547_s14 + $0x39] sm:$0xff]  ;;  %s3855_s8 = scalar_lea.vmem %s3952_s2, %s2375_s5 }
  0x15   : > { %v2567_v5 = vld [vmem:[%s2547_s14 + $0x31] sm:$0xff]  ;;  %v2577_v7 = vld [vmem:[%s2547_s14 + $0x49] sm:$0xff]  ;;  %v2587_v9 = vld [vmem:[%s2547_s14 + $0x61] sm:$0xff] }
  0x16   : > { %v2574_v6 = vld [vmem:[%s2547_s14 + $0x51] sm:$0xff]  ;;  %v2584_v8 = vld [vmem:[%s2547_s14 + $0x69] sm:$0xff]  ;;  %v187_v10 = vld [vmem:[%s2547_s14 + $0x81] sm:$0xff] }
  0x17   : > { %v186_v11 = vld [vmem:[%s2547_s14 + $0x79] sm:$0xff]  ;;  %v188_v13 = vld [vmem:[%s2547_s14 + $0x91] sm:$0xff]  ;;  %v190_v15 = vld [vmem:[%s2547_s14 + $0xa9] sm:$0xff] }
  0x18   : > { %472 = vrot.lane.b32.xlu1 %v2557_v2, %s2510_s15  ;;  %468 = vrot.lane.b32.xlu0 %v177_v3, %s2510_s15  ;;  %v189_v12 = vld [vmem:[%s2547_s14 + $0x99] sm:$0xff]  ;;  %v191_v14 = vld [vmem:[%s2547_s14 + $0xb1] sm:$0xff] }
  0x19   : > { %v193_v16 = vld [vmem:[%s2547_s14 + $0xc9] sm:$0xff]  ;;  %v192_v17 = vld [vmem:[%s2547_s14 + $0xc1] sm:$0xff]  ;;  %v2613_v19 = vld [vmem:[%s2547_s14 + $0xd9] sm:$0xff] }
  0x1a   : > { %v2610_v18 = vld [vmem:[%s2547_s14 + $0xe1] sm:$0xff]  ;;  %v2620_v20 = vld [vmem:[%s2547_s14 + $0xf9] sm:$0xff]  ;;  %v2623_v21 = vld [vmem:[%s2547_s14 + $0xf1] sm:$0xff] }
  0x1b   : > { %3998 = vst [vmem:[#allocation2_spill] sm:$0xff] %v2620_v20  ;;  %v2630_v22 = vld [vmem:[%s2547_s14 + $0x111] sm:$0xff]  ;;  %v2633_v23 = vld [vmem:[%s2547_s14 + $0x109] sm:$0xff]  ;;  %v2643_v25 = vld [vmem:[%s2547_s14 + $0x121] sm:$0xff] }
  0x1c   : > { %476 = vrot.lane.b32.xlu1 %v2564_v4, %s2510_s15  ;;  %474 = vrot.lane.b32.xlu0 %v2567_v5, %s2510_s15  ;;  %3999 = vst [vmem:[#allocation3_spill] sm:$0xff] %v2630_v22  ;;  %4000 = vst [vmem:[#allocation4_spill] sm:$0xff] %v2633_v23  ;;  %v2640_v24 = vld [vmem:[%s2547_s14 + $0x129] sm:$0xff]  ;;  %v203_v26 = vld [vmem:[%s2547_s14 + $0x141] sm:$0xff] }
  0x1d   : > { %4001 = vst [vmem:[#allocation5_spill] sm:$0xff] %v2640_v24  ;;  %4002 = vst [vmem:[#allocation6_spill] sm:$0xff] %v2643_v25  ;;  %v202_v27 = vld [vmem:[%s2547_s14 + $0x139] sm:$0xff]  ;;  %v204_v29 = vld [vmem:[%s2547_s14 + $0x151] sm:$0xff] }
  0x1e   : > { %v205_v28 = vld [vmem:[%s2547_s14 + $0x159] sm:$0xff]  ;;  %v207_v30 = vld [vmem:[%s2547_s14 + $0x171] sm:$0xff]  ;;  %v206_v31 = vld [vmem:[%s2547_s14 + $0x169] sm:$0xff] }
  0x1f   : > { %v209_v32 = vld [vmem:[%s2547_s14 + $0xa] sm:$0xff]  ;;  %v208_v33 = vld [vmem:[%s2547_s14 + $0x2] sm:$0xff]  ;;  %v2669_v35 = vld [vmem:[%s2547_s14 + $0x1a] sm:$0xff] }
  0x20   : > { %480 = vrot.lane.b32.xlu1 %v2574_v6, %s2510_s15  ;;  %478 = vrot.lane.b32.xlu0 %v2577_v7, %s2510_s15  ;;  %v2666_v34 = vld [vmem:[%s2547_s14 + $0x22] sm:$0xff]  ;;  %v2676_v36 = vld [vmem:[%s2547_s14 + $0x3a] sm:$0xff] }
  0x21   : > { %4003 = vst [vmem:[#allocation7_spill] sm:$0xff] %v2676_v36  ;;  %v2679_v37 = vld [vmem:[%s2547_s14 + $0x32] sm:$0xff]  ;;  %v2689_v39 = vld [vmem:[%s2547_s14 + $0x4a] sm:$0xff]  ;;  %v2699_v41 = vld [vmem:[%s2547_s14 + $0x62] sm:$0xff] }
  0x22   : > { %4004 = vst [vmem:[#allocation8_spill] sm:$0xff] %v2679_v37  ;;  %v2686_v38 = vld [vmem:[%s2547_s14 + $0x52] sm:$0xff]  ;;  %4006 = vst [vmem:[#allocation10_spill] sm:$0xff] %v2689_v39  ;;  %v2696_v40 = vld [vmem:[%s2547_s14 + $0x6a] sm:$0xff] }
  0x23   : > { %4005 = vst [vmem:[#allocation9_spill] sm:$0xff] %v2686_v38  ;;  %4007 = vst [vmem:[#allocation11_spill] sm:$0xff] %v2696_v40  ;;  %v219_v42 = vld [vmem:[%s2547_s14 + $0x82] sm:$0xff]  ;;  %v218_v43 = vld [vmem:[%s2547_s14 + $0x7a] sm:$0xff] }
  0x24   : > { %484 = vrot.lane.b32.xlu1 %v2584_v8, %s2510_s15  ;;  %482 = vrot.lane.b32.xlu0 %v2587_v9, %s2510_s15  ;;  %4008 = vst [vmem:[#allocation12_spill] sm:$0xff] %v2699_v41  ;;  %v221_v44 = vld [vmem:[%s2547_s14 + $0x9a] sm:$0xff]  ;;  %v220_v45 = vld [vmem:[%s2547_s14 + $0x92] sm:$0xff] }
  0x25   : > { %v223_v46 = vld [vmem:[%s2547_s14 + $0xb2] sm:$0xff]  ;;  %v222_v47 = vld [vmem:[%s2547_s14 + $0xaa] sm:$0xff]  ;;  %v224_v49 = vld [vmem:[%s2547_s14 + $0xc2] sm:$0xff] }
  0x26   : > { %v225_v48 = vld [vmem:[%s2547_s14 + $0xca] sm:$0xff]  ;;  %v2722_v50 = vld [vmem:[%s2547_s14 + $0xe2] sm:$0xff]  ;;  %v2725_v51 = vld [vmem:[%s2547_s14 + $0xda] sm:$0xff] }
  0x27   : > { %v2732_v52 = vld [vmem:[%s2547_s14 + $0xfa] sm:$0xff]  ;;  %v2735_v53 = vld [vmem:[%s2547_s14 + $0xf2] sm:$0xff]  ;;  %v2745_v55 = vld [vmem:[%s2547_s14 + $0x10a] sm:$0xff] }
  0x28   : > { %488 = vrot.lane.b32.xlu1 %v187_v10, %s2510_s15  ;;  %486 = vrot.lane.b32.xlu0 %v186_v11, %s2510_s15  ;;  %4009 = vst [vmem:[#allocation13_spill] sm:$0xff] %v2732_v52  ;;  %4010 = vst [vmem:[#allocation14_spill] sm:$0xff] %v2735_v53  ;;  %v2742_v54 = vld [vmem:[%s2547_s14 + $0x112] sm:$0xff]  ;;  %v2752_v56 = vld [vmem:[%s2547_s14 + $0x12a] sm:$0xff] }
  0x29   : > { %4011 = vst [vmem:[#allocation15_spill] sm:$0xff] %v2742_v54  ;;  %4012 = vst [vmem:[#allocation16_spill] sm:$0xff] %v2745_v55  ;;  %v2755_v57 = vld [vmem:[%s2547_s14 + $0x122] sm:$0xff]  ;;  %v2763_v59 = vld [vmem:[%s2547_s14 + $0x13a] sm:$0xff] }
  0x2a   : > { %4013 = vst [vmem:[#allocation17_spill] sm:$0xff] %v2752_v56  ;;  %4014 = vst [vmem:[#allocation18_spill] sm:$0xff] %v2755_v57  ;;  %v235_v58 = vld [vmem:[%s2547_s14 + $0x142] sm:$0xff]  ;;  %v237_v62 = vld [vmem:[%s2547_s14 + $0x15a] sm:$0xff] }
  0x2b   : > { %4015 = vst [vmem:[#allocation19_spill] sm:$0xff] %v2763_v59  ;;  %v236_v63 = vld [vmem:[%s2547_s14 + $0x152] sm:$0xff]  ;;  %v238_v11 = vld [vmem:[%s2547_s14 + $0x16a] sm:$0xff] }
  0x2c   : > { %492 = vrot.lane.b32.xlu1 %v189_v12, %s2510_s15  ;;  %490 = vrot.lane.b32.xlu0 %v188_v13, %s2510_s15  ;;  %v239_v10 = vld [vmem:[%s2547_s14 + $0x172] sm:$0xff] }
  0x30   : > { %496 = vrot.lane.b32.xlu1 %v191_v14, %s2510_s15  ;;  %494 = vrot.lane.b32.xlu0 %v190_v15, %s2510_s15 }
  0x34   : > { %500 = vrot.lane.b32.xlu1 %v193_v16, %s2510_s15  ;;  %498 = vrot.lane.b32.xlu0 %v192_v17, %s2510_s15  ;;  %v2793_v16 = vld [vmem:[%s2547_s14 + $0x18] sm:$0xff]  ;;  %v2796_v17 = vld [vmem:[%s2547_s14 + $0x20] sm:$0xff] }
  0x35   : > { %4020 = vst [vmem:[#allocation24_spill] sm:$0xff] %v2793_v16  ;;  %4021 = vst [vmem:[#allocation25_spill] sm:$0xff] %v2796_v17 }
  0x38   : > { %504 = vrot.lane.b32.xlu1 %v2610_v18, %s2510_s15  ;;  %502 = vrot.lane.b32.xlu0 %v2613_v19, %s2510_s15 }
  0x3c   : > { %508 = vrot.lane.b32.xlu1 %v2620_v20, %s2510_s15  ;;  %506 = vrot.lane.b32.xlu0 %v2623_v21, %s2510_s15 }
  0x40   : > { %512 = vrot.lane.b32.xlu1 %v2630_v22, %s2510_s15  ;;  %510 = vrot.lane.b32.xlu0 %v2633_v23, %s2510_s15 }
  0x44   : > { %516 = vrot.lane.b32.xlu1 %v2640_v24, %s2510_s15  ;;  %514 = vrot.lane.b32.xlu0 %v2643_v25, %s2510_s15  ;;  %v2942_v24 = vld [vmem:[%s2547_s14 + $0x120] sm:$0xff] }
  0x48   : > { %520 = vrot.lane.b32.xlu1 %v203_v26, %s2510_s15  ;;  %518 = vrot.lane.b32.xlu0 %v202_v27, %s2510_s15 }
  0x4c   : > { %524 = vrot.lane.b32.xlu1 %v205_v28, %s2510_s15  ;;  %522 = vrot.lane.b32.xlu0 %v204_v29, %s2510_s15  ;;  %v2807_v28 = vld [vmem:[%s2547_s14 + $0x38] sm:$0xff]  ;;  %v2810_v29 = vld [vmem:[%s2547_s14 + $0x30] sm:$0xff] }
  0x50   : > { %528 = vrot.lane.b32.xlu1 %v207_v30, %s2510_s15  ;;  %526 = vrot.lane.b32.xlu0 %v206_v31, %s2510_s15 }
  0x54   : > { %596 = vrot.lane.b32.xlu1 %v209_v32, %s2511_s16  ;;  %594 = vrot.lane.b32.xlu0 %v208_v33, %s2511_s16  ;;  %v2821_v32 = vld [vmem:[%s2547_s14 + $0x50] sm:$0xff]  ;;  %v2824_v33 = vld [vmem:[%s2547_s14 + $0x48] sm:$0xff] }
  0x58   : > { %600 = vrot.lane.b32.xlu1 %v2666_v34, %s2511_s16  ;;  %598 = vrot.lane.b32.xlu0 %v2669_v35, %s2511_s16 }
  0x5c   : > { %604 = vrot.lane.b32.xlu1 %v2676_v36, %s2511_s16  ;;  %602 = vrot.lane.b32.xlu0 %v2679_v37, %s2511_s16  ;;  %v2969_v36 = vld [vmem:[%s2547_s14 + $0x158] sm:$0xff] }
  0x60   : > { %608 = vrot.lane.b32.xlu1 %v2686_v38, %s2511_s16  ;;  %606 = vrot.lane.b32.xlu0 %v2689_v39, %s2511_s16 }
  0x64   : > { %612 = vrot.lane.b32.xlu1 %v2696_v40, %s2511_s16  ;;  %610 = vrot.lane.b32.xlu0 %v2699_v41, %s2511_s16  ;;  %v175_v41 = vld [vmem:[%s2547_s14 + $0x170] sm:$0xff] }
  0x68   : > { %616 = vrot.lane.b32.xlu1 %v219_v42, %s2511_s16  ;;  %614 = vrot.lane.b32.xlu0 %v218_v43, %s2511_s16  ;;  %v157_v42 = vld [vmem:[%s2547_s14 + $0x98] sm:$0xff]  ;;  %v156_v43 = vld [vmem:[%s2547_s14 + $0x90] sm:$0xff] }
  0x6c   : > { %620 = vrot.lane.b32.xlu1 %v221_v44, %s2511_s16  ;;  %618 = vrot.lane.b32.xlu0 %v220_v45, %s2511_s16 }
  0x70   : > { %624 = vrot.lane.b32.xlu1 %v223_v46, %s2511_s16  ;;  %622 = vrot.lane.b32.xlu0 %v222_v47, %s2511_s16  ;;  %v2833_v46 = vld [vmem:[%s2547_s14 + $0x68] sm:$0xff]  ;;  %v2836_v47 = vld [vmem:[%s2547_s14 + $0x60] sm:$0xff] }
  0x74   : > { %628 = vrot.lane.b32.xlu1 %v225_v48, %s2511_s16  ;;  %626 = vrot.lane.b32.xlu0 %v224_v49, %s2511_s16 }
  0x78   : > { %632 = vrot.lane.b32.xlu1 %v2722_v50, %s2511_s16  ;;  %630 = vrot.lane.b32.xlu0 %v2725_v51, %s2511_s16 }
  0x7c   : > { %636 = vrot.lane.b32.xlu1 %v2732_v52, %s2511_s16  ;;  %634 = vrot.lane.b32.xlu0 %v2735_v53, %s2511_s16  ;;  %v2972_v52 = vld [vmem:[%s2547_s14 + $0x150] sm:$0xff] }
  0x7d   : > { %4034 = vst [vmem:[#allocation38_spill] sm:$0xff] %v2972_v52 }
  0x80   : > { %640 = vrot.lane.b32.xlu1 %v2742_v54, %s2511_s16  ;;  %638 = vrot.lane.b32.xlu0 %v2745_v55, %s2511_s16  ;;  %v2952_v54 = vld [vmem:[%s2547_s14 + $0x140] sm:$0xff]  ;;  %v2955_v55 = vld [vmem:[%s2547_s14 + $0x138] sm:$0xff] }
  0x84   : > { %644 = vrot.lane.b32.xlu1 %v2752_v56, %s2511_s16  ;;  %642 = vrot.lane.b32.xlu0 %v2755_v57, %s2511_s16  ;;  %v2939_v57 = vld [vmem:[%s2547_s14 + $0x128] sm:$0xff] }
  0x86   : > { %v2765_v60 = vpop.permute.xlu1 %470  ;;  %v2767_v61 = vpop.permute.xlu0 %466 }
  0x87   : > { %4016 = vst [vmem:[#allocation20_spill] sm:$0xff] %v2765_v60  ;;  %4017 = vst [vmem:[#allocation21_spill] sm:$0xff] %v2767_v61  ;;  %v2928_v61 = vld [vmem:[%s2547_s14 + $0x108] sm:$0xff] }
  0x88   : > { %648 = vrot.lane.b32.xlu1 %v235_v58, %s2511_s16  ;;  %646 = vrot.lane.b32.xlu0 %v2763_v59, %s2511_s16  ;;  %v159_v58 = vld [vmem:[%s2547_s14 + $0xb0] sm:$0xff]  ;;  %v2886_v59 = vld [vmem:[%s2547_s14 + $0xc0] sm:$0xff] }
  0x89   : > { %4027 = vst [vmem:[#allocation31_spill] sm:$0xff] %v2886_v59 }
  0x8a   : > { %v2774_v1 = vpop.permute.xlu1 %472  ;;  %v2776_v3 = vpop.permute.xlu0 %468 }
  0x8b   : > { %4018 = vst [vmem:[#allocation22_spill] sm:$0xff] %v2774_v1  ;;  %4019 = vst [vmem:[#allocation23_spill] sm:$0xff] %v2776_v3  ;;  %v2883_v3 = vld [vmem:[%s2547_s14 + $0xc8] sm:$0xff] }
  0x8c   : > { %652 = vrot.lane.b32.xlu1 %v237_v62, %s2511_s16  ;;  %650 = vrot.lane.b32.xlu0 %v236_v63, %s2511_s16  ;;  %v158_v62 = vld [vmem:[%s2547_s14 + $0xa8] sm:$0xff]  ;;  %4026 = vst [vmem:[#allocation30_spill] sm:$0xff] %v2883_v3 }
  0x8e   : > { %v2782_v12 = vpop.permute.xlu1 %476  ;;  %v2784_v13 = vpop.permute.xlu0 %474 }
  0x8f   : > { %v1463_v20 = vsel %vm1458_vm0, %v2810_v29, %v2784_v13 }
  0x90   : > { %656 = vrot.lane.b32.xlu1 %v239_v10, %s2511_s16  ;;  %654 = vrot.lane.b32.xlu0 %v238_v11, %s2511_s16  ;;  %v2851_v11 = vld [vmem:[%s2547_s14 + $0x80] sm:$0xff] }
  0x92   : > { %v2788_v14 = vpop.permute.xlu1 %480  ;;  %v2790_v15 = vpop.permute.xlu0 %478 }
  0x93   : > { %v1465_v13 = vsel %vm1458_vm0, %v2824_v33, %v2790_v15 }
  0x94   : > { %724 = vrot.lane.b32.xlu1 %v2796_v17, %s2512_s17  ;;  %722 = vrot.lane.b32.xlu0 %v2793_v16, %s2512_s17  ;;  %v2854_v17 = vld [vmem:[%s2547_s14 + $0x78] sm:$0xff] }
  0x96   : > { %v2802_v26 = vpop.permute.xlu1 %484  ;;  %v2804_v27 = vpop.permute.xlu0 %482 }
  0x98   : > { %728 = vrot.lane.b32.xlu1 %v2807_v28, %s2512_s17  ;;  %726 = vrot.lane.b32.xlu0 %v2810_v29, %s2512_s17 }
  0x9a   : > { %v2816_v30 = vpop.permute.xlu1 %488  ;;  %v2818_v31 = vpop.permute.xlu0 %486 }
  0x9c   : > { %732 = vrot.lane.b32.xlu1 %v2821_v32, %s2512_s17  ;;  %730 = vrot.lane.b32.xlu0 %v2824_v33, %s2512_s17 }
  0x9e   : > { %v493_v44 = vpop.permute.xlu1 %492  ;;  %v491_v45 = vpop.permute.xlu0 %490 }
  0x9f   : > { %v2839_v48 = vsel %vm1458_vm0, %v157_v42, %v493_v44  ;;  %v2842_v49 = vsel %vm1458_vm0, %v156_v43, %v491_v45 }
  0xa0   : > { %736 = vrot.lane.b32.xlu1 %v2833_v46, %s2512_s17  ;;  %734 = vrot.lane.b32.xlu0 %v2836_v47, %s2512_s17 }
  0xa2   : > { %v497_v63 = vpop.permute.xlu1 %496  ;;  %v495_v10 = vpop.permute.xlu0 %494 }
  0xa3   : > { %v2857_v44 = vsel %vm1458_vm0, %v159_v58, %v497_v63  ;;  %v2860_v45 = vsel %vm1458_vm0, %v158_v62, %v495_v10 }
  0xa4   : > { %740 = vrot.lane.b32.xlu1 %v2851_v11, %s2512_s17  ;;  %738 = vrot.lane.b32.xlu0 %v2854_v17, %s2512_s17 }
  0xa6   : > { %v2866_v1 = vpop.permute.xlu1 %500  ;;  %v2868_v16 = vpop.permute.xlu0 %498 }
  0xa7   : > { %4022 = vst [vmem:[#allocation26_spill] sm:$0xff] %v2866_v1  ;;  %4023 = vst [vmem:[#allocation27_spill] sm:$0xff] %v2868_v16  ;;  %v2925_v16 = vld [vmem:[%s2547_s14 + $0x110] sm:$0xff] }
  0xa8   : > { %744 = vrot.lane.b32.xlu1 %v157_v42, %s2512_s17  ;;  %742 = vrot.lane.b32.xlu0 %v156_v43, %s2512_s17 }
  0xaa   : > { %v2872_v63 = vpop.permute.xlu1 %504  ;;  %v2874_v10 = vpop.permute.xlu0 %502 }
  0xab   : > { %4024 = vst [vmem:[#allocation28_spill] sm:$0xff] %v2872_v63  ;;  %4025 = vst [vmem:[#allocation29_spill] sm:$0xff] %v2874_v10 }
  0xac   : > { %748 = vrot.lane.b32.xlu1 %v159_v58, %s2512_s17  ;;  %746 = vrot.lane.b32.xlu0 %v158_v62, %s2512_s17  ;;  %v2897_v58 = vld [vmem:[%s2547_s14 + $0xe0] sm:$0xff]  ;;  %v2900_v62 = vld [vmem:[%s2547_s14 + $0xd8] sm:$0xff] }
  0xad   : > { %4028 = vst [vmem:[#allocation32_spill] sm:$0xff] %v2897_v58  ;;  %4029 = vst [vmem:[#allocation33_spill] sm:$0xff] %v2900_v62 }
  0xae   : > { %v2878_v60 = vpop.permute.xlu1 %508  ;;  %v2880_v1 = vpop.permute.xlu0 %506 }
  0xb0   : > { %752 = vrot.lane.b32.xlu1 %v2883_v3, %s2512_s17  ;;  %750 = vrot.lane.b32.xlu0 %v2886_v59, %s2512_s17  ;;  %v2911_v3 = vld [vmem:[%s2547_s14 + $0xf8] sm:$0xff]  ;;  %v2914_v59 = vld [vmem:[%s2547_s14 + $0xf0] sm:$0xff] }
  0xb2   : > { %v2892_v42 = vpop.permute.xlu1 %512  ;;  %v2894_v43 = vpop.permute.xlu0 %510 }
  0xb4   : > { %756 = vrot.lane.b32.xlu1 %v2897_v58, %s2512_s17  ;;  %754 = vrot.lane.b32.xlu0 %v2900_v62, %s2512_s17 }
  0xb6   : > { %v2906_v63 = vpop.permute.xlu1 %516  ;;  %v2908_v10 = vpop.permute.xlu0 %514 }
  0xb8   : > { %760 = vrot.lane.b32.xlu1 %v2911_v3, %s2512_s17  ;;  %758 = vrot.lane.b32.xlu0 %v2914_v59, %s2512_s17 }
  0xba   : > { %v2920_v58 = vpop.permute.xlu1 %520  ;;  %v2922_v62 = vpop.permute.xlu0 %518 }
  0xbc   : > { %764 = vrot.lane.b32.xlu1 %v2925_v16, %s2512_s17  ;;  %762 = vrot.lane.b32.xlu0 %v2928_v61, %s2512_s17 }
  0xbe   : > { %v2934_v40 = vpop.permute.xlu1 %524  ;;  %v2936_v56 = vpop.permute.xlu0 %522 }
  0xc0   : > { %768 = vrot.lane.b32.xlu1 %v2939_v57, %s2512_s17  ;;  %766 = vrot.lane.b32.xlu0 %v2942_v24, %s2512_s17 }
  0xc2   : > { %v529_v25 = vpop.permute.xlu1 %528  ;;  %v2949_v38 = vpop.permute.xlu0 %526 }
  0xc3   : > { %4030 = vst [vmem:[#allocation34_spill] sm:$0xff] %v2949_v38  ;;  %v2958_v22 = vsel %vm1458_vm0, %v175_v41, %v529_v25  ;;  %v1464_v38 = vsel %vm1458_vm0, %v2807_v28, %v2782_v12  ;;  %v1466_v12 = vsel %vm1458_vm0, %v2821_v32, %v2788_v14 }
  0xc4   : > { %4031 = vst [vmem:[#allocation35_spill] sm:$0xff] %v2958_v22  ;;  %772 = vrot.lane.b32.xlu1 %v2952_v54, %s2512_s17  ;;  %770 = vrot.lane.b32.xlu0 %v2955_v55, %s2512_s17  ;;  %v2983_v22 = vld [vmem:[%s2547_s14 + $0x168] sm:$0xff] }
  0xc5   : > { %4037 = vst [vmem:[#allocation41_spill] sm:$0xff] %v2983_v22 }
  0xc6   : > { %v2964_v39 = vpop.permute.xlu1 %596  ;;  %v2966_v23 = vpop.permute.xlu0 %594 }
  0xc7   : > { %4032 = vst [vmem:[#allocation36_spill] sm:$0xff] %v2964_v39  ;;  %4033 = vst [vmem:[#allocation37_spill] sm:$0xff] %v2966_v23  ;;  %v2179_v39 = vld [vmem:[%s2547_s14 + $0x188] sm:$0xff]  ;;  %v2178_v23 = vld [vmem:[%s2547_s14 + $0x180] sm:$0xff] }
  0xc8   : > { %776 = vrot.lane.b32.xlu1 %v2969_v36, %s2512_s17  ;;  %774 = vrot.lane.b32.xlu0 %v2972_v52, %s2512_s17 }
  0xca   : > { %v2978_v25 = vpop.permute.xlu1 %600  ;;  %v2980_v53 = vpop.permute.xlu0 %598 }
  0xcb   : > { %4035 = vst [vmem:[#allocation39_spill] sm:$0xff] %v2978_v25  ;;  %4036 = vst [vmem:[#allocation40_spill] sm:$0xff] %v2980_v53 }
  0xcc   : > { %780 = vrot.lane.b32.xlu1 %v175_v41, %s2512_s17  ;;  %778 = vrot.lane.b32.xlu0 %v2983_v22, %s2512_s17 }
  0xce   : > { %v605_v25 = vpop.permute.xlu1 %604  ;;  %v603_v53 = vpop.permute.xlu0 %602 }
  0xcf   : > { %v2997_v37 = vsel %vm1491_vm1, %v1464_v38, %v605_v25  ;;  %v3000_v41 = vsel %vm1491_vm1, %v1463_v20, %v603_v53 }
  0xd0   : > { %784 = vrot.lane.b32.xlu1 %v2179_v39, %s2512_s17  ;;  %782 = vrot.lane.b32.xlu0 %v2178_v23, %s2512_s17  ;;  %v1468_v23 = vsel %vm1458_vm0, %v2833_v46, %v2802_v26  ;;  %v1467_v39 = vsel %vm1458_vm0, %v2836_v47, %v2804_v27 }
  0xd2   : > { %v609_v22 = vpop.permute.xlu1 %608  ;;  %v607_v52 = vpop.permute.xlu0 %606 }
  0xd3   : > { %v3011_v38 = vsel %vm1491_vm1, %v1466_v12, %v609_v22  ;;  %v3014_v20 = vsel %vm1491_vm1, %v1465_v13, %v607_v52 }
  0xd4   : > { %852 = vrot.lane.b32.xlu1 %v2557_v2, %s2513_s18  ;;  %850 = vrot.lane.b32.xlu0 %v2550_v0, %s2513_s18  ;;  %v1470_v0 = vsel %vm1458_vm0, %v2851_v11, %v2816_v30  ;;  %v1469_v2 = vsel %vm1458_vm0, %v2854_v17, %v2818_v31 }
  0xd6   : > { %v613_v22 = vpop.permute.xlu1 %612  ;;  %v611_v53 = vpop.permute.xlu0 %610 }
  0xd7   : > { %v3027_v52 = vsel %vm1491_vm1, %v1468_v23, %v613_v22  ;;  %v3030_v14 = vsel %vm1491_vm1, %v1467_v39, %v611_v53 }
  0xd8   : > { %856 = vrot.lane.b32.xlu1 %v2564_v4, %s2513_s18  ;;  %854 = vrot.lane.b32.xlu0 %v2567_v5, %s2513_s18 }
  0xda   : > { %v617_v15 = vpop.permute.xlu1 %616  ;;  %v615_v26 = vpop.permute.xlu0 %614 }
  0xdb   : > { %v3043_v27 = vsel %vm1491_vm1, %v1470_v0, %v617_v15  ;;  %v3046_v25 = vsel %vm1491_vm1, %v1469_v2, %v615_v26 }
  0xdc   : > { %860 = vrot.lane.b32.xlu1 %v2574_v6, %s2513_s18  ;;  %858 = vrot.lane.b32.xlu0 %v2577_v7, %s2513_s18 }
  0xde   : > { %v621_v12 = vpop.permute.xlu1 %620  ;;  %v619_v30 = vpop.permute.xlu0 %618 }
  0xdf   : > { %v3054_v13 = vsel %vm1491_vm1, %v2839_v48, %v621_v12  ;;  %v3058_v31 = vsel %vm1491_vm1, %v2842_v49, %v619_v30 }
  0xe0   : > { %864 = vrot.lane.b32.xlu1 %v2584_v8, %s2513_s18  ;;  %862 = vrot.lane.b32.xlu0 %v2587_v9, %s2513_s18 }
  0xe2   : > { %v625_v23 = vpop.permute.xlu1 %624  ;;  %v623_v39 = vpop.permute.xlu0 %622 }
  0xe3   : > { %v3066_v22 = vsel %vm1491_vm1, %v2857_v44, %v625_v23  ;;  %v3070_v48 = vsel %vm1491_vm1, %v2860_v45, %v623_v39  ;;  %v1486_v23 = vsel %vm1458_vm0, %v2952_v54, %v2920_v58  ;;  %v1485_v39 = vsel %vm1458_vm0, %v2955_v55, %v2922_v62  ;;  %v1726_v58 = vld [vmem:[%s3951_s1 + $0x20] sm:$0xf] }
  0xe4   : > { %884 = vrot.lane.b32.xlu1 %v2610_v18, %s2513_s18  ;;  %882 = vrot.lane.b32.xlu0 %v2613_v19, %s2513_s18  ;;  %v1480_v18 = vsel %vm1458_vm0, %v2911_v3, %v2878_v60  ;;  %v1479_v19 = vsel %vm1458_vm0, %v2914_v59, %v2880_v1  ;;  %v1488_v62 = vsel %vm1458_vm0, %v2969_v36, %v2934_v40  ;;  %v4040_v40 = vld [vmem:[#allocation2_spill] sm:$0xff] }
  0xe6   : > { %v3076_v8 = vpop.permute.xlu1 %628  ;;  %v3078_v49 = vpop.permute.xlu0 %626 }
  0xe8   : > { %1010 = vrot.lane.b32.xlu1 %v2725_v51, %s2514_s19  ;;  %978 = vrot.lane.b32.xlu0 %v2669_v35, %s2514_s19 }
  0xea   : > { %v3084_v9 = vpop.permute.xlu1 %632  ;;  %v3086_v44 = vpop.permute.xlu0 %630 }
  0xec   : > { %1012 = vrot.lane.b32.xlu1 %v2722_v50, %s2514_s19  ;;  %980 = vrot.lane.b32.xlu0 %v2666_v34, %s2514_s19  ;;  %v1482_v34 = vsel %vm1458_vm0, %v2925_v16, %v2892_v42  ;;  %v1481_v50 = vsel %vm1458_vm0, %v2928_v61, %v2894_v43  ;;  %v1484_v43 = vsel %vm1458_vm0, %v2939_v57, %v2906_v63  ;;  %v1724_v63 = vld [vmem:[%s3951_s1 + $0x10] sm:$0xff] }
  0xee   : > { %v637_v51 = vpop.permute.xlu1 %636  ;;  %v635_v35 = vpop.permute.xlu0 %634 }
  0xef   : > { %v3099_v45 = vsel %vm1491_vm1, %v1480_v18, %v637_v51  ;;  %v3102_v53 = vsel %vm1491_vm1, %v1479_v19, %v635_v35  ;;  %v4038_v35 = vld [vmem:[#allocation38_spill] sm:$0xff] }
  0xf0   : > { %1138 = vrot.lane.b32.xlu1 %v2914_v59, %s2515_s20  ;;  %1106 = vrot.lane.b32.xlu0 %v2810_v29, %s2515_s20  ;;  %v1722_v59 = vld [vmem:[%s3951_s1] sm:$0xff]  ;;  %v1723_v29 = vld [vmem:[%s3951_s1 + $0x8] sm:$0xff] }
  0xf1   : > { %v2471_v42 = vpack.c.bf16 %v1723_v29, %v1722_v59  ;;  %v4042_v59 = vld [vmem:[#allocation41_spill] sm:$0xff] }
  0xf2   : > { %v641_v60 = vpop.permute.xlu1 %640  ;;  %v639_v1 = vpop.permute.xlu0 %638 }
  0xf3   : > { %v3115_v0 = vsel %vm1491_vm1, %v1482_v34, %v641_v60  ;;  %v3118_v2 = vsel %vm1491_vm1, %v1481_v50, %v639_v1  ;;  %2472 = vmatprep.subr.bf16.mxu0 %v2471_v42  ;;  %2479 = vmatprep.subr.bf16.mxu1 %v2471_v42  ;;  %v1487_v34 = vsel %vm1458_vm0, %v4038_v35, %v2936_v56  ;;  %v4039_v1 = vld [vmem:[#allocation8_spill] sm:$0xff]  ;;  %v4041_v56 = vld [vmem:[#allocation34_spill] sm:$0xff] }
  0xf4   : > { %1140 = vrot.lane.b32.xlu1 %v2911_v3, %s2515_s20  ;;  %1108 = vrot.lane.b32.xlu0 %v2807_v28, %s2515_s20  ;;  %v1483_v3 = vsel %vm1458_vm0, %v2942_v24, %v2908_v10  ;;  %v1725_v10 = vld [vmem:[%s3951_s1 + $0x18] sm:$0xff]  ;;  %v1489_v29 = vsel %vm1458_vm0, %v4042_v59, %v4041_v56 }
  0xf5   : > { %2474 = vmatpush3.bf16.msra.mxu0 %v2471_v42  ;;  %2482 = vmatpush3.bf16.msra.mxu1 %v2471_v42  ;;  %v2475_v30 = vpack.c.bf16 %v1725_v10, %v1724_v63  ;;  %v4044_v63 = vld [vmem:[#allocation14_spill] sm:$0xff] }
  0xf6   : > { %v645_v15 = vpop.permute.xlu1 %644  ;;  %v643_v26 = vpop.permute.xlu0 %642 }
  0xf7   : > { %v3137_v28 = vsel %vm1491_vm1, %v1484_v43, %v645_v15  ;;  %v3140_v12 = vsel %vm1491_vm1, %v1483_v3, %v643_v26  ;;  %2476 = vmatprep.subr.bf16.mxu0 %v2475_v30  ;;  %2480 = vmatprep.subr.bf16.mxu1 %v2475_v30  ;;  %v4043_v3 = vld [vmem:[#allocation35_spill] sm:$0xff] }
  0xf8   : > { %1266 = vrot.lane.b32.xlu1 %v2623_v21, %s2516_s25  ;;  %1234 = vrot.lane.b32.xlu0 %v2567_v5, %s2516_s25 }
  0xf9   : > { %2478 = vmatpush3.bf16.msra.mxu0 %v2475_v30  ;;  %2483 = vmatpush3.bf16.msra.mxu1 %v2475_v30 }
  0xfa   : > { %v649_v5 = vpop.permute.xlu1 %648  ;;  %v647_v18 = vpop.permute.xlu0 %646  ;;  %2421 = vmatprep.subr.msk.mxu0 %vm1824_vm2, %v1726_v58  ;;  %2481 = vmatprep.subr.msk.mxu1 %vm1824_vm2, %v1726_v58 }
  0xfb   : > { %v3159_v19 = vsel %vm1491_vm1, %v1486_v23, %v649_v5  ;;  %v3162_v51 = vsel %vm1491_vm1, %v1485_v39, %v647_v18  ;;  %v4045_v5 = vld [vmem:[#allocation13_spill] sm:$0xff]  ;;  %v4046_v18 = vld [vmem:[#allocation7_spill] sm:$0xff] }
  0xfc   : > { %1236 = vrot.lane.b32.xlu1 %v2564_v4, %s2516_s25  ;;  %886 = vrot.lane.b32.xlu0 %v2623_v21, %s2513_s18 }
  0xfd   : > { %2422 = vmatpush3.msk.msra.mxu0 %vm1824_vm2, %v1726_v58  ;;  %2484 = vmatpush3.msk.msra.mxu1 %vm1824_vm2, %v1726_v58 }
  0xfe   : > { %v653_v50 = vpop.permute.xlu1 %652  ;;  %v651_v4 = vpop.permute.xlu0 %650 }
  0xff   : > { %v3178_v21 = vsel %vm1491_vm1, %v1488_v62, %v653_v50  ;;  %v3181_v60 = vsel %vm1491_vm1, %v1487_v34, %v651_v4 }
 0x100   : > { %1362 = vrot.lane.b32.xlu1 %v4039_v1, %s2517_s4  ;;  %1268 = vrot.lane.b32.xlu0 %v4040_v40, %s2516_s25 }
 0x102   : > { %v657_v42 = vpop.permute.xlu1 %656  ;;  %v655_v43 = vpop.permute.xlu0 %654 }
 0x103   : > { %v3192_v15 = vsel %vm1491_vm1, %v4043_v3, %v657_v42  ;;  %v3195_v26 = vsel %vm1491_vm1, %v1489_v29, %v655_v43  ;;  %v4048_v42 = vld [vmem:[#allocation4_spill] sm:$0xff]  ;;  %v4053_v3 = vld [vmem:[#allocation10_spill] sm:$0xff] }
 0x104   : > { %888 = vrot.lane.b32.xlu1 %v4040_v40, %s2513_s18  ;;  %1394 = vrot.lane.b32.xlu0 %v4044_v63, %s2517_s4 }
 0x106   : > { %v3201_v10 = vpop.permute.xlu1 %724  ;;  %v3203_v30 = vpop.permute.xlu0 %722 }
 0x108   : > { %1014 = vrot.lane.b32.xlu1 %v4044_v63, %s2514_s19  ;;  %982 = vrot.lane.b32.xlu0 %v4039_v1, %s2514_s19 }
 0x10a   : > { %v3209_v23 = vpop.permute.xlu1 %728  ;;  %v3211_v39 = vpop.permute.xlu0 %726 }
 0x10c   : > { %1396 = vrot.lane.b32.xlu1 %v4045_v5, %s2517_s4  ;;  %1364 = vrot.lane.b32.xlu0 %v4046_v18, %s2517_s4 }
 0x10e   : > { %v733_v58 = vpop.permute.xlu1 %732  ;;  %v731_v62 = vpop.permute.xlu0 %730 }
 0x10f   : > { %v3219_v34 = vsel %vm1524_vm3, %v2997_v37, %v733_v58  ;;  %v3223_v50 = vsel %vm1524_vm3, %v3000_v41, %v731_v62 }
 0x110   : > { %1016 = vrot.lane.b32.xlu1 %v4045_v5, %s2514_s19  ;;  %984 = vrot.lane.b32.xlu0 %v4046_v18, %s2514_s19 }
 0x112   : > { %v737_v4 = vpop.permute.xlu1 %736  ;;  %v735_v1 = vpop.permute.xlu0 %734 }
 0x113   : > { %v3231_v40 = vsel %vm1524_vm3, %v3011_v38, %v737_v4  ;;  %v3235_v37 = vsel %vm1524_vm3, %v3014_v20, %v735_v1  ;;  %v4056_v1 = vld [vmem:[#allocation15_spill] sm:$0xff] }
 0x114   : > { %1142 = vrot.lane.b32.xlu1 %v2928_v61, %s2515_s20  ;;  %1110 = vrot.lane.b32.xlu0 %v2824_v33, %s2515_s20 }
 0x116   : > { %v741_v41 = vpop.permute.xlu1 %740  ;;  %v739_v56 = vpop.permute.xlu0 %738 }
 0x117   : > { %v3243_v29 = vsel %vm1524_vm3, %v3027_v52, %v741_v41  ;;  %v3247_v38 = vsel %vm1524_vm3, %v3030_v14, %v739_v56  ;;  %v4057_v41 = vld [vmem:[#allocation9_spill] sm:$0xff] }
 0x118   : > { %1144 = vrot.lane.b32.xlu1 %v2925_v16, %s2515_s20  ;;  %1112 = vrot.lane.b32.xlu0 %v2821_v32, %s2515_s20 }
 0x11a   : > { %v745_v61 = vpop.permute.xlu1 %744  ;;  %v743_v20 = vpop.permute.xlu0 %742 }
 0x11b   : > { %v3255_v33 = vsel %vm1524_vm3, %v3043_v27, %v745_v61  ;;  %v3259_v52 = vsel %vm1524_vm3, %v3046_v25, %v743_v20 }
 0x11c   : > { %4047 = vst [vmem:[#allocation38_spill] sm:$0xff] %v3255_v33  ;;  %1270 = vrot.lane.b32.xlu1 %v4048_v42, %s2516_s25  ;;  %1238 = vrot.lane.b32.xlu0 %v2577_v7, %s2516_s25 }
 0x11e   : > { %v749_v16 = vpop.permute.xlu1 %748  ;;  %v747_v14 = vpop.permute.xlu0 %746 }
 0x11f   : > { %v3267_v32 = vsel %vm1524_vm3, %v3054_v13, %v749_v16  ;;  %v3271_v27 = vsel %vm1524_vm3, %v3058_v31, %v747_v14  ;;  %v4054_v31 = vld [vmem:[#allocation3_spill] sm:$0xff] }
 0x120   : > { %4049 = vst [vmem:[#allocation8_spill] sm:$0xff] %v3267_v32  ;;  %4050 = vst [vmem:[#allocation2_spill] sm:$0xff] %v3271_v27  ;;  %1240 = vrot.lane.b32.xlu1 %v2574_v6, %s2516_s25  ;;  %890 = vrot.lane.b32.xlu0 %v4048_v42, %s2513_s18 }
 0x122   : > { %v753_v25 = vpop.permute.xlu1 %752  ;;  %v751_v43 = vpop.permute.xlu0 %750 }
 0x123   : > { %v3279_v7 = vsel %vm1524_vm3, %v3066_v22, %v753_v25  ;;  %v3283_v13 = vsel %vm1524_vm3, %v3070_v48, %v751_v43  ;;  %v4055_v22 = vld [vmem:[#allocation16_spill] sm:$0xff] }
 0x124   : > { %4051 = vst [vmem:[#allocation34_spill] sm:$0xff] %v3279_v7  ;;  %4052 = vst [vmem:[#allocation41_spill] sm:$0xff] %v3283_v13  ;;  %1366 = vrot.lane.b32.xlu1 %v4053_v3, %s2517_s4  ;;  %1272 = vrot.lane.b32.xlu0 %v4054_v31, %s2516_s25  ;;  %v4068_v7 = vld [vmem:[#allocation21_spill] sm:$0xff] }
 0x125   : > { %v4069_v13 = vld [vmem:[#allocation37_spill] sm:$0xff] }
 0x126   : > { %v3289_v6 = vpop.permute.xlu1 %756  ;;  %v3291_v63 = vpop.permute.xlu0 %754 }
 0x128   : > { %892 = vrot.lane.b32.xlu1 %v4054_v31, %s2513_s18  ;;  %1398 = vrot.lane.b32.xlu0 %v4055_v22, %s2517_s4 }
 0x12a   : > { %v3297_v5 = vpop.permute.xlu1 %760  ;;  %v3299_v48 = vpop.permute.xlu0 %758 }
 0x12c   : > { %1018 = vrot.lane.b32.xlu1 %v4055_v22, %s2514_s19  ;;  %986 = vrot.lane.b32.xlu0 %v4053_v3, %s2514_s19 }
 0x12e   : > { %v765_v18 = vpop.permute.xlu1 %764  ;;  %v763_v58 = vpop.permute.xlu0 %762 }
 0x12f   : > { %v3307_v62 = vsel %vm1524_vm3, %v3099_v45, %v765_v18  ;;  %v3311_v4 = vsel %vm1524_vm3, %v3102_v53, %v763_v58  ;;  %v4063_v18 = vld [vmem:[#allocation12_spill] sm:$0xff]  ;;  %v4064_v58 = vld [vmem:[#allocation5_spill] sm:$0xff] }
 0x130   : > { %1400 = vrot.lane.b32.xlu1 %v4056_v1, %s2517_s4  ;;  %1368 = vrot.lane.b32.xlu0 %v4057_v41, %s2517_s4 }
 0x132   : > { %v769_v56 = vpop.permute.xlu1 %768  ;;  %v767_v61 = vpop.permute.xlu0 %766 }
 0x133   : > { %v3319_v20 = vsel %vm1524_vm3, %v3115_v0, %v769_v56  ;;  %v3323_v45 = vsel %vm1524_vm3, %v3118_v2, %v767_v61 }
 0x134   : > { %1020 = vrot.lane.b32.xlu1 %v4056_v1, %s2514_s19  ;;  %988 = vrot.lane.b32.xlu0 %v4057_v41, %s2514_s19 }
 0x136   : > { %v773_v53 = vpop.permute.xlu1 %772  ;;  %v771_v42 = vpop.permute.xlu0 %770 }
 0x137   : > { %v3331_v16 = vsel %vm1524_vm3, %v3137_v28, %v773_v53  ;;  %v3335_v0 = vsel %vm1524_vm3, %v3140_v12, %v771_v42  ;;  %v4066_v42 = vld [vmem:[#allocation17_spill] sm:$0xff] }
 0x138   : > { %1146 = vrot.lane.b32.xlu1 %v2942_v24, %s2515_s20  ;;  %1114 = vrot.lane.b32.xlu0 %v2836_v47, %s2515_s20  ;;  %v2280_v24 = vld [vmem:[%s2547_s14 + $0x61] sm:$0xff] }
 0x13a   : > { %v777_v2 = vpop.permute.xlu1 %776  ;;  %v775_v14 = vpop.permute.xlu0 %774 }
 0x13b   : > { %v3343_v25 = vsel %vm1524_vm3, %v3159_v19, %v777_v2  ;;  %v3347_v28 = vsel %vm1524_vm3, %v3162_v51, %v775_v14  ;;  %v4060_v51 = vld [vmem:[#allocation6_spill] sm:$0xff]  ;;  %v4067_v2 = vld [vmem:[#allocation11_spill] sm:$0xff] }
 0x13c   : > { %1148 = vrot.lane.b32.xlu1 %v2939_v57, %s2515_s20  ;;  %1116 = vrot.lane.b32.xlu0 %v2833_v46, %s2515_s20  ;;  %v2281_v57 = vld [vmem:[%s2547_s14 + $0x69] sm:$0xff] }
 0x13e   : > { %v781_v12 = vpop.permute.xlu1 %780  ;;  %v779_v43 = vpop.permute.xlu0 %778 }
 0x13f   : > { %v3356_v47 = vsel %vm1524_vm3, %v3178_v21, %v781_v12  ;;  %v3360_v19 = vsel %vm1524_vm3, %v3181_v60, %v779_v43 }
 0x140   : > { %4058 = vst [vmem:[#allocation35_spill] sm:$0xff] %v3356_v47  ;;  %4059 = vst [vmem:[#allocation14_spill] sm:$0xff] %v3360_v19  ;;  %1274 = vrot.lane.b32.xlu1 %v4060_v51, %s2516_s25  ;;  %1242 = vrot.lane.b32.xlu0 %v2280_v24, %s2516_s25 }
 0x142   : > { %v785_v3 = vpop.permute.xlu1 %784  ;;  %v783_v31 = vpop.permute.xlu0 %782 }
 0x143   : > { %v3368_v46 = vsel %vm1524_vm3, %v3192_v15, %v785_v3  ;;  %v3372_v21 = vsel %vm1524_vm3, %v3195_v26, %v783_v31  ;;  %v4065_v26 = vld [vmem:[#allocation18_spill] sm:$0xff] }
 0x144   : > { %4061 = vst [vmem:[#allocation13_spill] sm:$0xff] %v3368_v46  ;;  %4062 = vst [vmem:[#allocation7_spill] sm:$0xff] %v3372_v21  ;;  %1244 = vrot.lane.b32.xlu1 %v2281_v57, %s2516_s25  ;;  %894 = vrot.lane.b32.xlu0 %v4060_v51, %s2513_s18  ;;  %v2298_v3 = vld [vmem:[%s2547_s14 + $0x139] sm:$0xff] }
 0x145   : > { %v2282_v31 = vld [vmem:[%s2547_s14 + $0x79] sm:$0xff] }
 0x146   : > { %v3377_v60 = vpop.permute.xlu1 %852  ;;  %v851_v22 = vpop.permute.xlu0 %850 }
 0x148   : > { %1370 = vrot.lane.b32.xlu1 %v4063_v18, %s2517_s4  ;;  %1276 = vrot.lane.b32.xlu0 %v4064_v58, %s2516_s25 }
 0x14a   : > { %v3383_v15 = vpop.permute.xlu1 %856  ;;  %v3385_v1 = vpop.permute.xlu0 %854 }
 0x14c   : > { %896 = vrot.lane.b32.xlu1 %v4064_v58, %s2513_s18  ;;  %1402 = vrot.lane.b32.xlu0 %v4065_v26, %s2517_s4 }
 0x14e   : > { %v3391_v41 = vpop.permute.xlu1 %860  ;;  %v3393_v56 = vpop.permute.xlu0 %858 }
 0x150   : > { %1022 = vrot.lane.b32.xlu1 %v4065_v26, %s2514_s19  ;;  %990 = vrot.lane.b32.xlu0 %v4063_v18, %s2514_s19  ;;  %v2299_v26 = vld [vmem:[%s2547_s14 + $0x141] sm:$0xff] }
 0x152   : > { %v3399_v61 = vpop.permute.xlu1 %864  ;;  %v3401_v53 = vpop.permute.xlu0 %862 }
 0x154   : > { %1404 = vrot.lane.b32.xlu1 %v4066_v42, %s2517_s4  ;;  %1372 = vrot.lane.b32.xlu0 %v4067_v2, %s2517_s4 }
 0x156   : > { %v3407_v14 = vpop.permute.xlu1 %884  ;;  %v883_v24 = vpop.permute.xlu0 %882 }
 0x158   : > { %1024 = vrot.lane.b32.xlu1 %v4066_v42, %s2514_s19  ;;  %992 = vrot.lane.b32.xlu0 %v4067_v2, %s2514_s19 }
 0x15a   : > { %v1011_v12 = vpop.permute.xlu1 %1010  ;;  %v979_v43 = vpop.permute.xlu0 %978 }
 0x15c   : > { %1150 = vrot.lane.b32.xlu1 %v2955_v55, %s2515_s20  ;;  %1118 = vrot.lane.b32.xlu0 %v2854_v17, %s2515_s20 }
 0x15e   : > { %v3417_v51 = vpop.permute.xlu1 %1012  ;;  %v3419_v57 = vpop.permute.xlu0 %980 }
 0x160   : > { %1152 = vrot.lane.b32.xlu1 %v2952_v54, %s2515_s20  ;;  %1120 = vrot.lane.b32.xlu0 %v2851_v11, %s2515_s20  ;;  %v144_v54 = vld [vmem:[%s2547_s14] sm:$0xff] }
 0x161   : > { %v2283_v11 = vld [vmem:[%s2547_s14 + $0x81] sm:$0xff]  ;;  %v1459_v46 = vsel %vm1458_vm0, %v144_v54, %v4068_v7 }
 0x162   : > { %v1139_v18 = vpop.permute.xlu1 %1138  ;;  %v1107_v55 = vpop.permute.xlu0 %1106  ;;  %v1492_v21 = vsel %vm1491_vm1, %v1459_v46, %v4069_v13  ;;  %v4070_v7 = vld [vmem:[#allocation27_spill] sm:$0xff] }
 0x163   : > { %v4071_v54 = vld [vmem:[#allocation31_spill] sm:$0xff] }
 0x164   : > { %1278 = vrot.lane.b32.xlu1 %v2298_v3, %s2516_s25  ;;  %1246 = vrot.lane.b32.xlu0 %v2282_v31, %s2516_s25  ;;  %v1475_v19 = vsel %vm1458_vm0, %v4071_v54, %v4070_v7  ;;  %v4072_v13 = vld [vmem:[#allocation19_spill] sm:$0xff] }
 0x166   : > { %v3429_v17 = vpop.permute.xlu1 %1140  ;;  %v3431_v58 = vpop.permute.xlu0 %1108 }
 0x168   : > { %898 = vrot.lane.b32.xlu1 %v2298_v3, %s2513_s18  ;;  %866 = vrot.lane.b32.xlu0 %v2282_v31, %s2513_s18  ;;  %v2314_v3 = vld [vmem:[%s2547_s14 + $0x7a] sm:$0xff]  ;;  %v1525_v31 = vsel %vm1524_vm3, %v1492_v21, %v3203_v30  ;;  %v1508_v30 = vsel %vm1491_vm1, %v1475_v19, %v3078_v49  ;;  %v145_v49 = vld [vmem:[%s2547_s14 + $0x8] sm:$0xff] }
 0x169   : > { %v1558_v27 = vsel %vm1557_vm4, %v1525_v31, %v851_v22  ;;  %v1541_v21 = vsel %vm1524_vm3, %v1508_v30, %v3291_v63  ;;  %v2236_v63 = vld [vmem:[%s2547_s14 + $0x13a] sm:$0xff] }
 0x16a   : > { %v1267_v42 = vpop.permute.xlu1 %1266  ;;  %v1235_v2 = vpop.permute.xlu0 %1234  ;;  %v1591_v33 = vsel %vm1590_vm5, %v1558_v27, %v979_v43  ;;  %v1574_v43 = vsel %vm1557_vm4, %v1541_v21, %v883_v24  ;;  %v2331_v21 = vld [vmem:[%s2547_s14 + $0x142] sm:$0xff] }
 0x16b   : > { %v1624_v46 = vsel %vm1623_vm6, %v1591_v33, %v1107_v55  ;;  %v1607_v54 = vsel %vm1590_vm5, %v1574_v43, %v1011_v12  ;;  %v4073_v12 = vld [vmem:[#allocation23_spill] sm:$0xff] }
 0x16c   : > { %1280 = vrot.lane.b32.xlu1 %v2299_v26, %s2516_s25  ;;  %1248 = vrot.lane.b32.xlu0 %v2283_v11, %s2516_s25  ;;  %v1657_v22 = vsel %vm1656_vm7, %v1624_v46, %v1235_v2  ;;  %v1640_v33 = vsel %vm1623_vm6, %v1607_v54, %v1139_v18  ;;  %v4076_v18 = vld [vmem:[#allocation36_spill] sm:$0xff] }
 0x16d   : > { %v1673_v19 = vsel %vm1656_vm7, %v1640_v33, %v1267_v42 }
 0x16e   : > { %v1237_v32 = vpop.permute.xlu1 %1236  ;;  %v3447_v47 = vpop.permute.xlu0 %886 }
 0x170   : > { %1406 = vrot.lane.b32.xlu1 %v4072_v13, %s2517_s4  ;;  %1374 = vrot.lane.b32.xlu0 %v2314_v3, %s2517_s4  ;;  %v4074_v13 = vld [vmem:[#allocation26_spill] sm:$0xff] }
 0x172   : > { %v1363_v31 = vpop.permute.xlu1 %1362  ;;  %v1269_v27 = vpop.permute.xlu0 %1268 }
 0x173   : > { %v1690_v7 = vsel %vm1689_vm8, %v1657_v22, %v1363_v31  ;;  %v2315_v22 = vld [vmem:[%s2547_s14 + $0x82] sm:$0xff] }
 0x174   : > { %900 = vrot.lane.b32.xlu1 %v2299_v26, %s2513_s18  ;;  %868 = vrot.lane.b32.xlu0 %v2283_v11, %s2513_s18  ;;  %v1460_v26 = vsel %vm1458_vm0, %v145_v49, %v4073_v12  ;;  %v4075_v11 = vld [vmem:[#allocation30_spill] sm:$0xff]  ;;  %v2300_v12 = vld [vmem:[%s2547_s14 + $0x151] sm:$0xff] }
 0x175   : > { %2423 = vmatprep.mubr.msk.f32.mxu0 %vm1727_vm9, %v1690_v7  ;;  %v1476_v30 = vsel %vm1458_vm0, %v4075_v11, %v4074_v13  ;;  %v1493_v46 = vsel %vm1491_vm1, %v1460_v26, %v4076_v18  ;;  %v2284_v26 = vld [vmem:[%s2547_s14 + $0x91] sm:$0xff] }
 0x176   : > { %v3473_v55 = vpop.permute.xlu1 %888  ;;  %v1395_v24 = vpop.permute.xlu0 %1394  ;;  %v1509_v42 = vsel %vm1491_vm1, %v1476_v30, %v3076_v8  ;;  %v1526_v31 = vsel %vm1524_vm3, %v1493_v46, %v3201_v10  ;;  %v4077_v18 = vld [vmem:[#allocation20_spill] sm:$0xff] }
 0x177   : > { %v1706_v2 = vsel %vm1689_vm8, %v1673_v19, %v1395_v24  ;;  %v1542_v43 = vsel %vm1524_vm3, %v1509_v42, %v3289_v6  ;;  %v4078_v46 = vld [vmem:[#allocation24_spill] sm:$0xff] }
 0x178   : > { %1026 = vrot.lane.b32.xlu1 %v2236_v63, %s2514_s19  ;;  %994 = vrot.lane.b32.xlu0 %v2314_v3, %s2514_s19  ;;  %v1559_v3 = vsel %vm1557_vm4, %v1526_v31, %v3377_v60  ;;  %v1575_v49 = vsel %vm1557_vm4, %v1542_v43, %v3407_v14  ;;  %v1461_v42 = vsel %vm1458_vm0, %v4078_v46, %v4077_v18  ;;  %v2285_v31 = vld [vmem:[%s2547_s14 + $0x99] sm:$0xff] }
 0x179   : > { %2447 = vmatprep.mubr.msk.f32.mxu1 %vm1727_vm9, %v1706_v2  ;;  %v1608_v8 = vsel %vm1590_vm5, %v1575_v49, %v3417_v51  ;;  %v1592_v33 = vsel %vm1590_vm5, %v1559_v3, %v3419_v57  ;;  %v4083_v18 = vld [vmem:[#allocation25_spill] sm:$0xff] }
 0x17a   : > { %v3494_v7 = vpop.permute.xlu1 %1014  ;;  %v983_v54 = vpop.permute.xlu0 %982  ;;  %v1641_v10 = vsel %vm1623_vm6, %v1608_v8, %v3429_v17  ;;  %v1625_v6 = vsel %vm1623_vm6, %v1592_v33, %v3431_v58  ;;  %v2252_v17 = vld [vmem:[%s2547_s14 + $0x90] sm:$0xff]  ;;  %v4080_v33 = vld [vmem:[#allocation29_spill] sm:$0xff] }
 0x17b   : > { %v1658_v60 = vsel %vm1656_vm7, %v1625_v6, %v1237_v32  ;;  %v1674_v14 = vsel %vm1656_vm7, %v1641_v10, %v1269_v27  ;;  %v2253_v27 = vld [vmem:[%s2547_s14 + $0x98] sm:$0xff] }
 0x17c   : > { %1408 = vrot.lane.b32.xlu1 %v2331_v21, %s2517_s4  ;;  %1376 = vrot.lane.b32.xlu0 %v2315_v22, %s2517_s4  ;;  %v4081_v10 = vld [vmem:[#allocation33_spill] sm:$0xff] }
 0x17d   : > { %v1477_v6 = vsel %vm1458_vm0, %v4081_v10, %v4080_v33 }
 0x17e   : > { %v1397_v51 = vpop.permute.xlu1 %1396  ;;  %v1365_v63 = vpop.permute.xlu0 %1364 }
 0x17f   : > { %v1707_v19 = vsel %vm1689_vm8, %v1674_v14, %v1397_v51  ;;  %v1691_v57 = vsel %vm1689_vm8, %v1658_v60, %v1365_v63  ;;  %v1510_v14 = vsel %vm1491_vm1, %v1477_v6, %v3086_v44  ;;  %v2332_v51 = vld [vmem:[%s2547_s14 + $0x152] sm:$0xff] }
 0x180   : > { %1028 = vrot.lane.b32.xlu1 %v2331_v21, %s2514_s19  ;;  %996 = vrot.lane.b32.xlu0 %v2315_v22, %s2514_s19  ;;  %v2301_v22 = vld [vmem:[%s2547_s14 + $0x159] sm:$0xff] }
 0x181   : > { %2424 = vmatmul.mubr.msk.f32.vlgmr.msra.gmra.mrb[0].mxu0 %vm1727_vm9, %v1691_v57  ;;  %2448 = vmatmul.mubr.msk.f32.vlgmr.msra.gmra.mrb[0].mxu1 %vm1727_vm9, %v1707_v19  ;;  %v2316_v63 = vld [vmem:[%s2547_s14 + $0x92] sm:$0xff] }
 0x182   : > { %v3519_v32 = vpop.permute.xlu1 %1016  ;;  %v3521_v58 = vpop.permute.xlu0 %984 }
 0x184   : > { %1154 = vrot.lane.b32.xlu1 %v4038_v35, %s2515_s20  ;;  %1122 = vrot.lane.b32.xlu0 %v2252_v17, %s2515_s20 }
 0x186   : > { %v1143_v24 = vpop.permute.xlu1 %1142  ;;  %v1111_v2 = vpop.permute.xlu0 %1110 }
 0x188   : > { %1156 = vrot.lane.b32.xlu1 %v2969_v36, %s2515_s20  ;;  %1124 = vrot.lane.b32.xlu0 %v2253_v27, %s2515_s20  ;;  %v4079_v36 = vld [vmem:[#allocation40_spill] sm:$0xff] }
 0x189   : > { %v1494_v21 = vsel %vm1491_vm1, %v1461_v42, %v4079_v36  ;;  %v4085_v42 = vld [vmem:[#allocation32_spill] sm:$0xff] }
 0x18a   : > { %v1145_v13 = vpop.permute.xlu1 %1144  ;;  %v1113_v11 = vpop.permute.xlu0 %1112  ;;  %v1527_v43 = vsel %vm1524_vm3, %v1494_v21, %v3211_v39 }
 0x18b   : > { %v1560_v8 = vsel %vm1557_vm4, %v1527_v43, %v3385_v1  ;;  %v1543_v1 = vsel %vm1524_vm3, %v1510_v14, %v3299_v48 }
 0x18c   : > { %1282 = vrot.lane.b32.xlu1 %v2300_v12, %s2516_s25  ;;  %1250 = vrot.lane.b32.xlu0 %v2284_v26, %s2516_s25  ;;  %v1593_v60 = vsel %vm1590_vm5, %v1560_v8, %v983_v54  ;;  %v1576_v54 = vsel %vm1557_vm4, %v1543_v1, %v3447_v47 }
 0x18d   : > { %v1626_v39 = vsel %vm1623_vm6, %v1593_v60, %v1111_v2  ;;  %v2333_v60 = vld [vmem:[%s2547_s14 + $0x15a] sm:$0xff] }
 0x18e   : > { %v1271_v35 = vpop.permute.xlu1 %1270  ;;  %v1239_v30 = vpop.permute.xlu0 %1238 }
 0x18f   : > { %v1659_v19 = vsel %vm1656_vm7, %v1626_v39, %v1239_v30  ;;  %v4082_v30 = vld [vmem:[#allocation22_spill] sm:$0xff] }
 0x190   : > { %902 = vrot.lane.b32.xlu1 %v2300_v12, %s2513_s18  ;;  %870 = vrot.lane.b32.xlu0 %v2284_v26, %s2513_s18  ;;  %v1609_v12 = vsel %vm1590_vm5, %v1576_v54, %v3494_v7  ;;  %v1462_v46 = vsel %vm1458_vm0, %v4083_v18, %v4082_v30  ;;  %v4084_v7 = vld [vmem:[#allocation28_spill] sm:$0xff] }
 0x191   : > { %v1642_v44 = vsel %vm1623_vm6, %v1609_v12, %v1143_v24  ;;  %v1478_v36 = vsel %vm1458_vm0, %v4085_v42, %v4084_v7  ;;  %v4086_v24 = vld [vmem:[#allocation39_spill] sm:$0xff]  ;;  %v2287_v7 = vld [vmem:[%s2547_s14 + $0xb1] sm:$0xff] }
 0x192   : > { %v1241_v3 = vpop.permute.xlu1 %1240  ;;  %v3545_v49 = vpop.permute.xlu0 %890  ;;  %v1675_v48 = vsel %vm1656_vm7, %v1642_v44, %v1271_v35  ;;  %v1495_v35 = vsel %vm1491_vm1, %v1462_v46, %v4086_v24  ;;  %v1511_v21 = vsel %vm1491_vm1, %v1478_v36, %v3084_v9  ;;  %v2286_v12 = vld [vmem:[%s2547_s14 + $0xa9] sm:$0xff]  ;;  %v2303_v46 = vld [vmem:[%s2547_s14 + $0x171] sm:$0xff] }
 0x193   : > { %v1528_v43 = vsel %vm1524_vm3, %v1495_v35, %v3209_v23  ;;  %v1544_v8 = vsel %vm1524_vm3, %v1511_v21, %v3297_v5 }
 0x194   : > { %1284 = vrot.lane.b32.xlu1 %v2301_v22, %s2516_s25  ;;  %1252 = vrot.lane.b32.xlu0 %v2285_v31, %s2516_s25  ;;  %v1577_v10 = vsel %vm1557_vm4, %v1544_v8, %v3473_v55  ;;  %v2318_v8 = vld [vmem:[%s2547_s14 + $0xaa] sm:$0xff] }
 0x195   : > { %v1610_v6 = vsel %vm1590_vm5, %v1577_v10, %v3519_v32 }
 0x196   : > { %v1367_v57 = vpop.permute.xlu1 %1366  ;;  %v1273_v17 = vpop.permute.xlu0 %1272  ;;  %v1643_v23 = vsel %vm1623_vm6, %v1610_v6, %v1145_v13  ;;  %v1563_v6 = vsel %vm1557_vm4, %v3219_v34, %v3391_v41 }
 0x197   : > { %v1692_v27 = vsel %vm1689_vm8, %v1659_v19, %v1367_v57  ;;  %v1676_v55 = vsel %vm1656_vm7, %v1643_v23, %v1273_v17  ;;  %v2271_v19 = vld [vmem:[%s2547_s14 + $0x170] sm:$0xff] }
 0x198   : > { %1410 = vrot.lane.b32.xlu1 %v2332_v51, %s2517_s4  ;;  %1378 = vrot.lane.b32.xlu0 %v2316_v63, %s2517_s4  ;;  %v2255_v57 = vld [vmem:[%s2547_s14 + $0xb0] sm:$0xff] }
 0x199   : > { %2426 = vmatprep.mubr.msk.f32.mxu0 %vm1727_vm9, %v1692_v27  ;;  %v2302_v27 = vld [vmem:[%s2547_s14 + $0x169] sm:$0xff] }
 0x19a   : > { %v3573_v2 = vpop.permute.xlu1 %892  ;;  %v1399_v26 = vpop.permute.xlu0 %1398 }
 0x19b   : > { %v1708_v47 = vsel %vm1689_vm8, %v1675_v48, %v1399_v26 }
 0x19c   : > { %904 = vrot.lane.b32.xlu1 %v2301_v22, %s2513_s18  ;;  %872 = vrot.lane.b32.xlu0 %v2285_v31, %s2513_s18  ;;  %v1561_v31 = vsel %vm1557_vm4, %v1528_v43, %v3383_v15  ;;  %v2317_v15 = vld [vmem:[%s2547_s14 + $0x9a] sm:$0xff]  ;;  %v2334_v43 = vld [vmem:[%s2547_s14 + $0x16a] sm:$0xff] }
 0x19d   : > { %2450 = vmatprep.mubr.msk.f32.mxu1 %vm1727_vm9, %v1708_v47  ;;  %v1594_v9 = vsel %vm1590_vm5, %v1561_v31, %v3521_v58  ;;  %v1562_v47 = vsel %vm1557_vm4, %v3223_v50, %v3393_v56  ;;  %v1578_v50 = vsel %vm1557_vm4, %v3311_v4, %v3545_v49 }
 0x19e   : > { %v1019_v33 = vpop.permute.xlu1 %1018  ;;  %v987_v22 = vpop.permute.xlu0 %986  ;;  %v1627_v5 = vsel %vm1623_vm6, %v1594_v9, %v1113_v11  ;;  %v1579_v9 = vsel %vm1557_vm4, %v3307_v62, %v3573_v2 }
 0x19f   : > { %v1660_v14 = vsel %vm1656_vm7, %v1627_v5, %v1241_v3  ;;  %v2254_v3 = vld [vmem:[%s2547_s14 + $0xa8] sm:$0xff]  ;;  %v1595_v30 = vsel %vm1590_vm5, %v1562_v47, %v987_v22  ;;  %v1611_v35 = vsel %vm1590_vm5, %v1578_v50, %v1019_v33 }
 0x1a0   : > { %1030 = vrot.lane.b32.xlu1 %v2332_v51, %s2514_s19  ;;  %998 = vrot.lane.b32.xlu0 %v2316_v63, %s2514_s19  ;;  %v2305_v50 = vld [vmem:[%s2547_s14 + $0x189] sm:$0xff] }
 0x1a2   : > { %v1401_v39 = vpop.permute.xlu1 %1400  ;;  %v1369_v32 = vpop.permute.xlu0 %1368 }
 0x1a3   : > { %v1709_v58 = vsel %vm1689_vm8, %v1676_v55, %v1401_v39  ;;  %v1693_v51 = vsel %vm1689_vm8, %v1660_v14, %v1369_v32  ;;  %v2335_v39 = vld [vmem:[%s2547_s14 + $0x172] sm:$0xff] }
 0x1a4   : > { %1412 = vrot.lane.b32.xlu1 %v2333_v60, %s2517_s4  ;;  %1380 = vrot.lane.b32.xlu0 %v2317_v15, %s2517_s4  ;;  %v2319_v32 = vld [vmem:[%s2547_s14 + $0xb2] sm:$0xff] }
 0x1a5   : > { %2427 = vmatmul.mubr.msk.f32.gmra.mrb[2].mxu0 %vm1727_vm9, %v1693_v51  ;;  %2451 = vmatmul.mubr.msk.f32.gmra.mrb[2].mxu1 %vm1727_vm9, %v1709_v58 }
 0x1a6   : > { %v1021_v13 = vpop.permute.xlu1 %1020  ;;  %v989_v11 = vpop.permute.xlu0 %988 }
 0x1a7   : > { %v1612_v23 = vsel %vm1590_vm5, %v1579_v9, %v1021_v13  ;;  %v1596_v5 = vsel %vm1590_vm5, %v1563_v6, %v989_v11 }
 0x1a8   : > { %1032 = vrot.lane.b32.xlu1 %v2333_v60, %s2514_s19  ;;  %1000 = vrot.lane.b32.xlu0 %v2317_v15, %s2514_s19 }
 0x1aa   : > { %v1147_v63 = vpop.permute.xlu1 %1146  ;;  %v1115_v1 = vpop.permute.xlu0 %1114 }
 0x1ab   : > { %v1628_v18 = vsel %vm1623_vm6, %v1595_v30, %v1115_v1  ;;  %v1644_v21 = vsel %vm1623_vm6, %v1611_v35, %v1147_v63  ;;  %v2256_v63 = vld [vmem:[%s2547_s14 + $0xc0] sm:$0xff] }
 0x1ac   : > { %1158 = vrot.lane.b32.xlu1 %v4042_v59, %s2515_s20  ;;  %1126 = vrot.lane.b32.xlu0 %v2254_v3, %s2515_s20  ;;  %v2272_v3 = vld [vmem:[%s2547_s14 + $0x180] sm:$0xff] }
 0x1ae   : > { %v1149_v17 = vpop.permute.xlu1 %1148  ;;  %v1117_v54 = vpop.permute.xlu0 %1116 }
 0x1af   : > { %v1645_v60 = vsel %vm1623_vm6, %v1612_v23, %v1149_v17  ;;  %v1629_v15 = vsel %vm1623_vm6, %v1596_v5, %v1117_v54  ;;  %v2257_v17 = vld [vmem:[%s2547_s14 + $0xc8] sm:$0xff] }
 0x1b0   : > { %1160 = vrot.lane.b32.xlu1 %v2271_v19, %s2515_s20  ;;  %1128 = vrot.lane.b32.xlu0 %v2255_v57, %s2515_s20  ;;  %v2273_v57 = vld [vmem:[%s2547_s14 + $0x188] sm:$0xff] }
 0x1b2   : > { %v1275_v44 = vpop.permute.xlu1 %1274  ;;  %v1243_v48 = vpop.permute.xlu0 %1242 }
 0x1b3   : > { %v1661_v42 = vsel %vm1656_vm7, %v1628_v18, %v1243_v48  ;;  %v1677_v22 = vsel %vm1656_vm7, %v1644_v21, %v1275_v44  ;;  %v2288_v44 = vld [vmem:[%s2547_s14 + $0xc1] sm:$0xff]  ;;  %v1564_v18 = vsel %vm1557_vm4, %v3235_v37, %v3401_v53  ;;  %v2289_v37 = vld [vmem:[%s2547_s14 + $0xc9] sm:$0xff] }
 0x1b4   : > { %1286 = vrot.lane.b32.xlu1 %v2302_v27, %s2516_s25  ;;  %1254 = vrot.lane.b32.xlu0 %v2286_v12, %s2516_s25 }
 0x1b6   : > { %v1245_v59 = vpop.permute.xlu1 %1244  ;;  %v3629_v26 = vpop.permute.xlu0 %894 }
 0x1b7   : > { %v1662_v34 = vsel %vm1656_vm7, %v1629_v15, %v1245_v59 }
 0x1b8   : > { %906 = vrot.lane.b32.xlu1 %v2302_v27, %s2513_s18  ;;  %874 = vrot.lane.b32.xlu0 %v2286_v12, %s2513_s18  ;;  %v2304_v12 = vld [vmem:[%s2547_s14 + $0x181] sm:$0xff] }
 0x1ba   : > { %v1371_v36 = vpop.permute.xlu1 %1370  ;;  %v1277_v24 = vpop.permute.xlu0 %1276 }
 0x1bb   : > { %v1694_v56 = vsel %vm1689_vm8, %v1661_v42, %v1371_v36  ;;  %v1678_v41 = vsel %vm1656_vm7, %v1645_v60, %v1277_v24 }
 0x1bc   : > { %1288 = vrot.lane.b32.xlu1 %v2303_v46, %s2516_s25  ;;  %1256 = vrot.lane.b32.xlu0 %v2287_v7, %s2516_s25 }
 0x1bd   : > { %2429 = vmatprep.mubr.msk.f32.mxu0 %vm1727_vm9, %v1694_v56 }
 0x1be   : > { %v3653_v31 = vpop.permute.xlu1 %896  ;;  %v1403_v10 = vpop.permute.xlu0 %1402 }
 0x1bf   : > { %v1710_v4 = vsel %vm1689_vm8, %v1677_v22, %v1403_v10  ;;  %v1581_v6 = vsel %vm1557_vm4, %v3319_v20, %v3653_v31 }
 0x1c0   : > { %1414 = vrot.lane.b32.xlu1 %v2334_v43, %s2517_s4  ;;  %1382 = vrot.lane.b32.xlu0 %v2318_v8, %s2517_s4 }
 0x1c1   : > { %2453 = vmatprep.mubr.msk.f32.mxu1 %vm1727_vm9, %v1710_v4 }
 0x1c2   : > { %v1023_v49 = vpop.permute.xlu1 %1022  ;;  %v991_v33 = vpop.permute.xlu0 %990 }
 0x1c3   : > { %v1597_v42 = vsel %vm1590_vm5, %v1564_v18, %v991_v33  ;;  %v1565_v33 = vsel %vm1557_vm4, %v3231_v40, %v3399_v61 }
 0x1c4   : > { %908 = vrot.lane.b32.xlu1 %v2303_v46, %s2513_s18  ;;  %876 = vrot.lane.b32.xlu0 %v2287_v7, %s2513_s18  ;;  %v1580_v46 = vsel %vm1557_vm4, %v3323_v45, %v3629_v26 }
 0x1c5   : > { %v1613_v7 = vsel %vm1590_vm5, %v1580_v46, %v1023_v49 }
 0x1c6   : > { %v1405_v14 = vpop.permute.xlu1 %1404  ;;  %v1373_v62 = vpop.permute.xlu0 %1372 }
 0x1c7   : > { %v1711_v2 = vsel %vm1689_vm8, %v1678_v41, %v1405_v14  ;;  %v1695_v55 = vsel %vm1689_vm8, %v1662_v34, %v1373_v62  ;;  %v2337_v41 = vld [vmem:[%s2547_s14 + $0x18a] sm:$0xff] }
 0x1c8   : > { %1034 = vrot.lane.b32.xlu1 %v2334_v43, %s2514_s19  ;;  %1002 = vrot.lane.b32.xlu0 %v2318_v8, %s2514_s19  ;;  %v2336_v43 = vld [vmem:[%s2547_s14 + $0x182] sm:$0xff]  ;;  %v2321_v14 = vld [vmem:[%s2547_s14 + $0xca] sm:$0xff] }
 0x1c9   : > { %2430 = vmatmul.mubr.msk.f32.gmra.mrb[4].mxu0 %vm1727_vm9, %v1695_v55  ;;  %2454 = vmatmul.mubr.msk.f32.gmra.mrb[4].mxu1 %vm1727_vm9, %v1711_v2  ;;  %v2320_v8 = vld [vmem:[%s2547_s14 + $0xc2] sm:$0xff] }
 0x1ca   : > { %v1025_v58 = vpop.permute.xlu1 %1024  ;;  %v993_v51 = vpop.permute.xlu0 %992 }
 0x1cb   : > { %v1614_v9 = vsel %vm1590_vm5, %v1581_v6, %v1025_v58  ;;  %v1598_v23 = vsel %vm1590_vm5, %v1565_v33, %v993_v51  ;;  %v2258_v58 = vld [vmem:[%s2547_s14 + $0xd8] sm:$0xff] }
 0x1cc   : > { %1416 = vrot.lane.b32.xlu1 %v2335_v39, %s2517_s4  ;;  %1384 = vrot.lane.b32.xlu0 %v2319_v32, %s2517_s4 }
 0x1ce   : > { %v1151_v13 = vpop.permute.xlu1 %1150  ;;  %v1119_v11 = vpop.permute.xlu0 %1118 }
 0x1cf   : > { %v1646_v36 = vsel %vm1623_vm6, %v1613_v7, %v1151_v13  ;;  %v1630_v24 = vsel %vm1623_vm6, %v1597_v42, %v1119_v11  ;;  %v2275_v11 = vld [vmem:[%s2547_s14 + $0x1a0] sm:$0xff] }
 0x1d0   : > { %1036 = vrot.lane.b32.xlu1 %v2335_v39, %s2514_s19  ;;  %1004 = vrot.lane.b32.xlu0 %v2319_v32, %s2514_s19  ;;  %v2274_v32 = vld [vmem:[%s2547_s14 + $0x198] sm:$0xff] }
 0x1d2   : > { %v1153_v1 = vpop.permute.xlu1 %1152  ;;  %v1121_v19 = vpop.permute.xlu0 %1120 }
 0x1d3   : > { %v1647_v5 = vsel %vm1623_vm6, %v1614_v9, %v1153_v1  ;;  %v1631_v60 = vsel %vm1623_vm6, %v1598_v23, %v1121_v19  ;;  %v2306_v19 = vld [vmem:[%s2547_s14 + $0x199] sm:$0xff] }
 0x1d4   : > { %1162 = vrot.lane.b32.xlu1 %v2272_v3, %s2515_s20  ;;  %1130 = vrot.lane.b32.xlu0 %v2256_v63, %s2515_s20  ;;  %v2259_v3 = vld [vmem:[%s2547_s14 + $0xe0] sm:$0xff] }
 0x1d6   : > { %v1279_v54 = vpop.permute.xlu1 %1278  ;;  %v1247_v27 = vpop.permute.xlu0 %1246 }
 0x1d7   : > { %v1679_v53 = vsel %vm1656_vm7, %v1646_v36, %v1279_v54  ;;  %v1663_v45 = vsel %vm1656_vm7, %v1630_v24, %v1247_v27  ;;  %v2307_v27 = vld [vmem:[%s2547_s14 + $0x1a1] sm:$0xff] }
 0x1d8   : > { %1164 = vrot.lane.b32.xlu1 %v2273_v57, %s2515_s20  ;;  %1132 = vrot.lane.b32.xlu0 %v2257_v17, %s2515_s20  ;;  %v2290_v57 = vld [vmem:[%s2547_s14 + $0xd9] sm:$0xff] }
 0x1d9   : > { %v2338_v24 = vld [vmem:[%s2547_s14 + $0x19a] sm:$0xff] }
 0x1da   : > { %v3695_v48 = vpop.permute.xlu1 %898  ;;  %v3697_v59 = vpop.permute.xlu0 %866 }
 0x1db   : > { %v1566_v18 = vsel %vm1557_vm4, %v3247_v38, %v3697_v59 }
 0x1dc   : > { %1290 = vrot.lane.b32.xlu1 %v2304_v12, %s2516_s25  ;;  %1258 = vrot.lane.b32.xlu0 %v2288_v44, %s2516_s25 }
 0x1de   : > { %v1281_v47 = vpop.permute.xlu1 %1280  ;;  %v1249_v30 = vpop.permute.xlu0 %1248 }
 0x1df   : > { %v1680_v40 = vsel %vm1656_vm7, %v1647_v5, %v1281_v47  ;;  %v1664_v61 = vsel %vm1656_vm7, %v1631_v60, %v1249_v30  ;;  %v1582_v30 = vsel %vm1557_vm4, %v3335_v0, %v3695_v48  ;;  %v2322_v0 = vld [vmem:[%s2547_s14 + $0xda] sm:$0xff] }
 0x1e0   : > { %910 = vrot.lane.b32.xlu1 %v2304_v12, %s2513_s18  ;;  %878 = vrot.lane.b32.xlu0 %v2288_v44, %s2513_s18  ;;  %v2291_v12 = vld [vmem:[%s2547_s14 + $0xe1] sm:$0xff] }
 0x1e2   : > { %v1407_v26 = vpop.permute.xlu1 %1406  ;;  %v1375_v56 = vpop.permute.xlu0 %1374 }
 0x1e3   : > { %v1712_v35 = vsel %vm1689_vm8, %v1679_v53, %v1407_v26  ;;  %v1696_v21 = vsel %vm1689_vm8, %v1663_v45, %v1375_v56  ;;  %v2339_v45 = vld [vmem:[%s2547_s14 + $0x1a2] sm:$0xff] }
 0x1e4   : > { %1292 = vrot.lane.b32.xlu1 %v2305_v50, %s2516_s25  ;;  %1260 = vrot.lane.b32.xlu0 %v2289_v37, %s2516_s25  ;;  %v2323_v26 = vld [vmem:[%s2547_s14 + $0xe2] sm:$0xff] }
 0x1e5   : > { %2432 = vmatprep.mubr.msk.f32.mxu0 %vm1727_vm9, %v1696_v21  ;;  %2456 = vmatprep.mubr.msk.f32.mxu1 %vm1727_vm9, %v1712_v35 }
 0x1e6   : > { %v3725_v22 = vpop.permute.xlu1 %900  ;;  %v3727_v10 = vpop.permute.xlu0 %868 }
 0x1e8   : > { %1418 = vrot.lane.b32.xlu1 %v2336_v43, %s2517_s4  ;;  %1386 = vrot.lane.b32.xlu0 %v2320_v8, %s2517_s4 }
 0x1ea   : > { %v1027_v4 = vpop.permute.xlu1 %1026  ;;  %v995_v49 = vpop.permute.xlu0 %994 }
 0x1eb   : > { %v1615_v46 = vsel %vm1590_vm5, %v1582_v30, %v1027_v4  ;;  %v1599_v7 = vsel %vm1590_vm5, %v1566_v18, %v995_v49  ;;  %v1567_v4 = vsel %vm1557_vm4, %v3243_v29, %v3727_v10 }
 0x1ec   : > { %912 = vrot.lane.b32.xlu1 %v2305_v50, %s2513_s18  ;;  %880 = vrot.lane.b32.xlu0 %v2289_v37, %s2513_s18 }
 0x1ee   : > { %v1409_v15 = vpop.permute.xlu1 %1408  ;;  %v1377_v20 = vpop.permute.xlu0 %1376 }
 0x1ef   : > { %v1713_v31 = vsel %vm1689_vm8, %v1680_v40, %v1409_v15  ;;  %v1697_v34 = vsel %vm1689_vm8, %v1664_v61, %v1377_v20 }
 0x1f0   : > { %1038 = vrot.lane.b32.xlu1 %v2336_v43, %s2514_s19  ;;  %1006 = vrot.lane.b32.xlu0 %v2320_v8, %s2514_s19  ;;  %v1583_v8 = vsel %vm1557_vm4, %v3331_v16, %v3725_v22 }
 0x1f1   : > { %2433 = vmatmul.mubr.msk.f32.gmra.mrb[6].mxu0 %vm1727_vm9, %v1697_v34  ;;  %2457 = vmatmul.mubr.msk.f32.gmra.mrb[6].mxu1 %vm1727_vm9, %v1713_v31 }
 0x1f2   : > { %v1029_v62 = vpop.permute.xlu1 %1028  ;;  %v997_v2 = vpop.permute.xlu0 %996 }
 0x1f3   : > { %v1616_v49 = vsel %vm1590_vm5, %v1583_v8, %v1029_v62  ;;  %v1600_v33 = vsel %vm1590_vm5, %v1567_v4, %v997_v2 }
 0x1f4   : > { %1420 = vrot.lane.b32.xlu1 %v2337_v41, %s2517_s4  ;;  %1388 = vrot.lane.b32.xlu0 %v2321_v14, %s2517_s4 }
 0x1f6   : > { %v1155_v55 = vpop.permute.xlu1 %1154  ;;  %v1123_v39 = vpop.permute.xlu0 %1122 }
 0x1f7   : > { %v1648_v42 = vsel %vm1623_vm6, %v1615_v46, %v1155_v55  ;;  %v1632_v36 = vsel %vm1623_vm6, %v1599_v7, %v1123_v39 }
 0x1f8   : > { %1040 = vrot.lane.b32.xlu1 %v2337_v41, %s2514_s19  ;;  %1008 = vrot.lane.b32.xlu0 %v2321_v14, %s2514_s19 }
 0x1fa   : > { %v1157_v51 = vpop.permute.xlu1 %1156  ;;  %v1125_v13 = vpop.permute.xlu0 %1124 }
 0x1fb   : > { %v1649_v6 = vsel %vm1623_vm6, %v1616_v49, %v1157_v51  ;;  %v1633_v9 = vsel %vm1623_vm6, %v1600_v33, %v1125_v13 }
 0x1fc   : > { %1166 = vrot.lane.b32.xlu1 %v2274_v32, %s2515_s20  ;;  %1134 = vrot.lane.b32.xlu0 %v2258_v58, %s2515_s20 }
 0x1fe   : > { %v1283_v63 = vpop.permute.xlu1 %1282  ;;  %v1251_v1 = vpop.permute.xlu0 %1250 }
 0x1ff   : > { %v1681_v48 = vsel %vm1656_vm7, %v1648_v42, %v1283_v63  ;;  %v1665_v38 = vsel %vm1656_vm7, %v1632_v36, %v1251_v1 }
 0x200   : > { %1168 = vrot.lane.b32.xlu1 %v2275_v11, %s2515_s20  ;;  %1136 = vrot.lane.b32.xlu0 %v2259_v3, %s2515_s20 }
 0x202   : > { %v3767_v17 = vpop.permute.xlu1 %902  ;;  %v3769_v54 = vpop.permute.xlu0 %870 }
 0x203   : > { %v1584_v39 = vsel %vm1557_vm4, %v3347_v28, %v3767_v17  ;;  %v1568_v32 = vsel %vm1557_vm4, %v3259_v52, %v3769_v54 }
 0x204   : > { %1294 = vrot.lane.b32.xlu1 %v2306_v19, %s2516_s25  ;;  %1262 = vrot.lane.b32.xlu0 %v2290_v57, %s2516_s25 }
 0x206   : > { %v1285_v44 = vpop.permute.xlu1 %1284  ;;  %v1253_v47 = vpop.permute.xlu0 %1252 }
 0x207   : > { %v1682_v23 = vsel %vm1656_vm7, %v1649_v6, %v1285_v44  ;;  %v1666_v5 = vsel %vm1656_vm7, %v1633_v9, %v1253_v47  ;;  %v4087_v44 = vld [vmem:[#allocation38_spill] sm:$0xff] }
 0x208   : > { %1296 = vrot.lane.b32.xlu1 %v2307_v27, %s2516_s25  ;;  %1264 = vrot.lane.b32.xlu0 %v2291_v12, %s2516_s25  ;;  %v4088_v9 = vld [vmem:[#allocation14_spill] sm:$0xff] }
 0x20a   : > { %v1411_v59 = vpop.permute.xlu1 %1410  ;;  %v1379_v50 = vpop.permute.xlu0 %1378 }
 0x20b   : > { %v1714_v37 = vsel %vm1689_vm8, %v1681_v48, %v1411_v59  ;;  %v1698_v53 = vsel %vm1689_vm8, %v1665_v38, %v1379_v50 }
 0x20c   : > { %1422 = vrot.lane.b32.xlu1 %v2338_v24, %s2517_s4  ;;  %1390 = vrot.lane.b32.xlu0 %v2322_v0, %s2517_s4 }
 0x20d   : > { %2435 = vmatprep.mubr.msk.f32.mxu0 %vm1727_vm9, %v1698_v53  ;;  %2459 = vmatprep.mubr.msk.f32.mxu1 %vm1727_vm9, %v1714_v37 }
 0x20e   : > { %v905_v56 = vpop.permute.xlu1 %904  ;;  %v873_v35 = vpop.permute.xlu0 %872 }
 0x20f   : > { %v1585_v12 = vsel %vm1557_vm4, %v3343_v25, %v905_v56  ;;  %v1569_v47 = vsel %vm1557_vm4, %v4087_v44, %v873_v35 }
 0x210   : > { %1424 = vrot.lane.b32.xlu1 %v2339_v45, %s2517_s4  ;;  %1392 = vrot.lane.b32.xlu0 %v2323_v26, %s2517_s4 }
 0x212   : > { %v1031_v21 = vpop.permute.xlu1 %1030  ;;  %v999_v43 = vpop.permute.xlu0 %998 }
 0x213   : > { %v1617_v58 = vsel %vm1590_vm5, %v1584_v39, %v1031_v21  ;;  %v1601_v51 = vsel %vm1590_vm5, %v1568_v32, %v999_v43  ;;  %v4091_v32 = vld [vmem:[#allocation8_spill] sm:$0xff] }
 0x216   : > { %v1413_v60 = vpop.permute.xlu1 %1412  ;;  %v1381_v40 = vpop.permute.xlu0 %1380 }
 0x217   : > { %v1715_v16 = vsel %vm1689_vm8, %v1682_v23, %v1413_v60  ;;  %v1699_v22 = vsel %vm1689_vm8, %v1666_v5, %v1381_v40  ;;  %v4089_v5 = vld [vmem:[#allocation2_spill] sm:$0xff] }
 0x218   : > { %2436 = vmatmul.mubr.msk.f32.gmra.mrb[8].mxu0 %vm1727_vm9, %v1699_v22  ;;  %2460 = vmatmul.mubr.msk.f32.gmra.mrb[8].mxu1 %vm1727_vm9, %v1715_v16 }
 0x21a   : > { %v1033_v29 = vpop.permute.xlu1 %1032  ;;  %v1001_v10 = vpop.permute.xlu0 %1000 }
 0x21b   : > { %v1618_v30 = vsel %vm1590_vm5, %v1585_v12, %v1033_v29  ;;  %v1602_v18 = vsel %vm1590_vm5, %v1569_v47, %v1001_v10 }
 0x21e   : > { %v1159_v61 = vpop.permute.xlu1 %1158  ;;  %v1127_v15 = vpop.permute.xlu0 %1126 }
 0x21f   : > { %v1650_v13 = vsel %vm1623_vm6, %v1617_v58, %v1159_v61  ;;  %v1634_v11 = vsel %vm1623_vm6, %v1601_v51, %v1127_v15 }
 0x222   : > { %v1161_v20 = vpop.permute.xlu1 %1160  ;;  %v1129_v31 = vpop.permute.xlu0 %1128 }
 0x223   : > { %v1651_v46 = vsel %vm1623_vm6, %v1618_v30, %v1161_v20  ;;  %v1635_v7 = vsel %vm1623_vm6, %v1602_v18, %v1129_v31 }
 0x226   : > { %v1287_v34 = vpop.permute.xlu1 %1286  ;;  %v1255_v41 = vpop.permute.xlu0 %1254 }
 0x227   : > { %v1683_v3 = vsel %vm1656_vm7, %v1650_v13, %v1287_v34  ;;  %v1667_v63 = vsel %vm1656_vm7, %v1634_v11, %v1255_v41 }
 0x22a   : > { %v907_v14 = vpop.permute.xlu1 %906  ;;  %v875_v62 = vpop.permute.xlu0 %874 }
 0x22b   : > { %v1586_v23 = vsel %vm1557_vm4, %v4088_v9, %v907_v14  ;;  %v1570_v60 = vsel %vm1557_vm4, %v4089_v5, %v875_v62 }
 0x22e   : > { %v1289_v2 = vpop.permute.xlu1 %1288  ;;  %v1257_v55 = vpop.permute.xlu0 %1256 }
 0x22f   : > { %v1684_v42 = vsel %vm1656_vm7, %v1651_v46, %v1289_v2  ;;  %v1668_v36 = vsel %vm1656_vm7, %v1635_v7, %v1257_v55  ;;  %v4090_v55 = vld [vmem:[#allocation35_spill] sm:$0xff] }
 0x232   : > { %v1415_v1 = vpop.permute.xlu1 %1414  ;;  %v1383_v19 = vpop.permute.xlu0 %1382 }
 0x233   : > { %v1716_v28 = vsel %vm1689_vm8, %v1683_v3, %v1415_v1  ;;  %v1700_v57 = vsel %vm1689_vm8, %v1667_v63, %v1383_v19 }
 0x234   : > { %2438 = vmatprep.mubr.msk.f32.mxu0 %vm1727_vm9, %v1700_v57  ;;  %2462 = vmatprep.mubr.msk.f32.mxu1 %vm1727_vm9, %v1716_v28 }
 0x236   : > { %v909_v52 = vpop.permute.xlu1 %908  ;;  %v877_v17 = vpop.permute.xlu0 %876 }
 0x237   : > { %v1587_v39 = vsel %vm1557_vm4, %v4090_v55, %v909_v52  ;;  %v1571_v58 = vsel %vm1557_vm4, %v4091_v32, %v877_v17 }
 0x23a   : > { %v1035_v54 = vpop.permute.xlu1 %1034  ;;  %v1003_v27 = vpop.permute.xlu0 %1002 }
 0x23b   : > { %v1619_v40 = vsel %vm1590_vm5, %v1586_v23, %v1035_v54  ;;  %v1603_v16 = vsel %vm1590_vm5, %v1570_v60, %v1003_v27 }
 0x23e   : > { %v1417_v24 = vpop.permute.xlu1 %1416  ;;  %v1385_v0 = vpop.permute.xlu0 %1384 }
 0x23f   : > { %v1717_v25 = vsel %vm1689_vm8, %v1684_v42, %v1417_v24  ;;  %v1701_v48 = vsel %vm1689_vm8, %v1668_v36, %v1385_v0 }
 0x240   : > { %2439 = vmatmul.mubr.msk.f32.gmra.mrb[10].mxu0 %vm1727_vm9, %v1701_v48  ;;  %2463 = vmatmul.mubr.msk.f32.gmra.mrb[10].mxu1 %vm1727_vm9, %v1717_v25  ;;  %v4092_v25 = vld [vmem:[#allocation7_spill] sm:$0xff] }
 0x242   : > { %v1037_v38 = vpop.permute.xlu1 %1036  ;;  %v1005_v59 = vpop.permute.xlu0 %1004 }
 0x243   : > { %v1620_v51 = vsel %vm1590_vm5, %v1587_v39, %v1037_v38  ;;  %v1604_v13 = vsel %vm1590_vm5, %v1571_v58, %v1005_v59  ;;  %v4093_v38 = vld [vmem:[#allocation41_spill] sm:$0xff] }
 0x246   : > { %v1163_v50 = vpop.permute.xlu1 %1162  ;;  %v1131_v37 = vpop.permute.xlu0 %1130 }
 0x247   : > { %v1652_v22 = vsel %vm1623_vm6, %v1619_v40, %v1163_v50  ;;  %v1636_v29 = vsel %vm1623_vm6, %v1603_v16, %v1131_v37 }
 0x24a   : > { %v1165_v53 = vpop.permute.xlu1 %1164  ;;  %v1133_v45 = vpop.permute.xlu0 %1132 }
 0x24b   : > { %v1653_v11 = vsel %vm1623_vm6, %v1620_v51, %v1165_v53  ;;  %v1637_v3 = vsel %vm1623_vm6, %v1604_v13, %v1133_v45 }
 0x24e   : > { %v1291_v26 = vpop.permute.xlu1 %1290  ;;  %v1259_v56 = vpop.permute.xlu0 %1258 }
 0x24f   : > { %v1685_v10 = vsel %vm1656_vm7, %v1652_v22, %v1291_v26  ;;  %v1669_v61 = vsel %vm1656_vm7, %v1636_v29, %v1259_v56 }
 0x252   : > { %v3848_v35 = vpop.permute.xlu1 %910  ;;  %v3850_v21 = vpop.permute.xlu0 %878 }
 0x253   : > { %v1588_v48 = vsel %vm1557_vm4, %v4092_v25, %v3848_v35  ;;  %v1572_v59 = vsel %vm1557_vm4, %v4093_v38, %v3850_v21 }
 0x254   : > { %v2425_v43 = vpop.f32.mrb[0].mxu0  ;;  %v2449_v8 = vpop.f32.mrb[0].mxu1 }
 0x255   : > { %2054 = vst [vmem:[%s3855_s8 + $0x8] sm:$0xff] %v2425_v43  ;;  %2070 = vst [vmem:[%s3855_s8 + $0x88] sm:$0xff] %v2449_v8  ;;  %v1894_v4 = vpop.f32.mrb[1].mxu0  ;;  %v1974_v49 = vpop.f32.mrb[1].mxu1 }
 0x256   : > { %2053 = vst [vmem:[%s3855_s8] sm:$0xff] %v1894_v4  ;;  %2069 = vst [vmem:[%s3855_s8 + $0x80] sm:$0xff] %v1974_v49  ;;  %v1293_v33 = vpop.permute.xlu1 %1292  ;;  %v1261_v6 = vpop.permute.xlu0 %1260  ;;  %v4094_v4 = vld [vmem:[#allocation13_spill] sm:$0xff]  ;;  %v4095_v49 = vld [vmem:[#allocation34_spill] sm:$0xff] }
 0x257   : > { %v1686_v63 = vsel %vm1656_vm7, %v1653_v11, %v1293_v33  ;;  %v1670_v1 = vsel %vm1656_vm7, %v1637_v3, %v1261_v6 }
 0x25a   : > { %v1419_v15 = vpop.permute.xlu1 %1418  ;;  %v1387_v20 = vpop.permute.xlu0 %1386 }
 0x25b   : > { %v1718_v31 = vsel %vm1689_vm8, %v1685_v10, %v1419_v15  ;;  %v1702_v34 = vsel %vm1689_vm8, %v1669_v61, %v1387_v20 }
 0x25c   : > { %2441 = vmatprep.mubr.msk.f32.mxu0 %vm1727_vm9, %v1702_v34  ;;  %2465 = vmatprep.mubr.msk.f32.mxu1 %vm1727_vm9, %v1718_v31 }
 0x25e   : > { %v913_v41 = vpop.permute.xlu1 %912  ;;  %v881_v14 = vpop.permute.xlu0 %880 }
 0x25f   : > { %v1589_v35 = vsel %vm1557_vm4, %v4094_v4, %v913_v41  ;;  %v1573_v21 = vsel %vm1557_vm4, %v4095_v49, %v881_v14 }
 0x262   : > { %v1039_v62 = vpop.permute.xlu1 %1038  ;;  %v1007_v2 = vpop.permute.xlu0 %1006 }
 0x263   : > { %v1621_v50 = vsel %vm1590_vm5, %v1588_v48, %v1039_v62  ;;  %v1605_v37 = vsel %vm1590_vm5, %v1572_v59, %v1007_v2 }
 0x266   : > { %v1421_v19 = vpop.permute.xlu1 %1420  ;;  %v1389_v28 = vpop.permute.xlu0 %1388 }
 0x267   : > { %v1719_v57 = vsel %vm1689_vm8, %v1686_v63, %v1421_v19  ;;  %v1703_v52 = vsel %vm1689_vm8, %v1670_v1, %v1389_v28 }
 0x268   : > { %2442 = vmatmul.mubr.msk.f32.gmra.mrb[12].mxu0 %vm1727_vm9, %v1703_v52  ;;  %2466 = vmatmul.mubr.msk.f32.gmra.mrb[12].mxu1 %vm1727_vm9, %v1719_v57 }
 0x26a   : > { %v1041_v17 = vpop.permute.xlu1 %1040  ;;  %v1009_v54 = vpop.permute.xlu0 %1008 }
 0x26b   : > { %v1622_v9 = vsel %vm1590_vm5, %v1589_v35, %v1041_v17  ;;  %v1606_v23 = vsel %vm1590_vm5, %v1573_v21, %v1009_v54 }
 0x26e   : > { %v1167_v27 = vpop.permute.xlu1 %1166  ;;  %v1135_v12 = vpop.permute.xlu0 %1134 }
 0x26f   : > { %v1654_v53 = vsel %vm1623_vm6, %v1621_v50, %v1167_v27  ;;  %v1638_v45 = vsel %vm1623_vm6, %v1605_v37, %v1135_v12 }
 0x272   : > { %v1169_v44 = vpop.permute.xlu1 %1168  ;;  %v1137_v47 = vpop.permute.xlu0 %1136 }
 0x273   : > { %v1655_v5 = vsel %vm1623_vm6, %v1622_v9, %v1169_v44  ;;  %v1639_v60 = vsel %vm1623_vm6, %v1606_v23, %v1137_v47 }
 0x276   : > { %v1295_v30 = vpop.permute.xlu1 %1294  ;;  %v1263_v18 = vpop.permute.xlu0 %1262 }
 0x277   : > { %v1687_v26 = vsel %vm1656_vm7, %v1654_v53, %v1295_v30  ;;  %v1671_v56 = vsel %vm1656_vm7, %v1638_v45, %v1263_v18 }
 0x278   : > { %v2428_v46 = vpop.f32.mrb[2].mxu0  ;;  %v2452_v7 = vpop.f32.mrb[2].mxu1 }
 0x279   : > { %2056 = vst [vmem:[%s3855_s8 + $0x18] sm:$0xff] %v2428_v46  ;;  %2072 = vst [vmem:[%s3855_s8 + $0x98] sm:$0xff] %v2452_v7  ;;  %v1904_v42 = vpop.f32.mrb[3].mxu0  ;;  %v1984_v36 = vpop.f32.mrb[3].mxu1 }
 0x27a   : > { %2055 = vst [vmem:[%s3855_s8 + $0x10] sm:$0xff] %v1904_v42  ;;  %2071 = vst [vmem:[%s3855_s8 + $0x90] sm:$0xff] %v1984_v36  ;;  %v1297_v24 = vpop.permute.xlu1 %1296  ;;  %v1265_v0 = vpop.permute.xlu0 %1264 }
 0x27b   : > { %v1688_v40 = vsel %vm1656_vm7, %v1655_v5, %v1297_v24  ;;  %v1672_v16 = vsel %vm1656_vm7, %v1639_v60, %v1265_v0 }
 0x27e   : > { %v1423_v43 = vpop.permute.xlu1 %1422  ;;  %v1391_v8 = vpop.permute.xlu0 %1390 }
 0x27f   : > { %v1720_v33 = vsel %vm1689_vm8, %v1687_v26, %v1423_v43  ;;  %v1704_v6 = vsel %vm1689_vm8, %v1671_v56, %v1391_v8 }
 0x280   : > { %2444 = vmatprep.mubr.msk.f32.mxu0 %vm1727_vm9, %v1704_v6  ;;  %2468 = vmatprep.mubr.msk.f32.mxu1 %vm1727_vm9, %v1720_v33 }
 0x282   : > { %v1425_v22 = vpop.permute.xlu1 %1424  ;;  %v1393_v29 = vpop.permute.xlu0 %1392 }
 0x283   : > { %v1721_v10 = vsel %vm1689_vm8, %v1688_v40, %v1425_v22  ;;  %v1705_v61 = vsel %vm1689_vm8, %v1672_v16, %v1393_v29 }
 0x284   : > { %2445 = vmatmul.mubr.msk.f32.gmra.mrb[14].mxu0 %vm1727_vm9, %v1705_v61  ;;  %2469 = vmatmul.mubr.msk.f32.gmra.mrb[14].mxu1 %vm1727_vm9, %v1721_v10 }
 0x29c   : > { %v2431_v15 = vpop.f32.mrb[4].mxu0  ;;  %v2455_v20 = vpop.f32.mrb[4].mxu1 }
 0x29d   : > { %2058 = vst [vmem:[%s3855_s8 + $0x28] sm:$0xff] %v2431_v15  ;;  %2074 = vst [vmem:[%s3855_s8 + $0xa8] sm:$0xff] %v2455_v20  ;;  %v1914_v31 = vpop.f32.mrb[5].mxu0  ;;  %v1994_v34 = vpop.f32.mrb[5].mxu1 }
 0x29e   : > { %2057 = vst [vmem:[%s3855_s8 + $0x20] sm:$0xff] %v1914_v31  ;;  %2073 = vst [vmem:[%s3855_s8 + $0xa0] sm:$0xff] %v1994_v34 }
 0x2c4   : > { %v2434_v41 = vpop.f32.mrb[6].mxu0  ;;  %v2458_v14 = vpop.f32.mrb[6].mxu1 }
 0x2c5   : > { %2060 = vst [vmem:[%s3855_s8 + $0x38] sm:$0xff] %v2434_v41  ;;  %2076 = vst [vmem:[%s3855_s8 + $0xb8] sm:$0xff] %v2458_v14  ;;  %v1924_v62 = vpop.f32.mrb[7].mxu0  ;;  %v2004_v2 = vpop.f32.mrb[7].mxu1 }
 0x2c6   : > { %2059 = vst [vmem:[%s3855_s8 + $0x30] sm:$0xff] %v1924_v62  ;;  %2075 = vst [vmem:[%s3855_s8 + $0xb0] sm:$0xff] %v2004_v2 }
 0x2eb   : > { %v2437_v55 = vpop.f32.mrb[8].mxu0  ;;  %v2461_v39 = vpop.f32.mrb[8].mxu1 }
 0x2ec   : > { %2062 = vst [vmem:[%s3855_s8 + $0x48] sm:$0xff] %v2437_v55  ;;  %2078 = vst [vmem:[%s3855_s8 + $0xc8] sm:$0xff] %v2461_v39  ;;  %v1934_v32 = vpop.f32.mrb[9].mxu0  ;;  %v2014_v58 = vpop.f32.mrb[9].mxu1 }
 0x2ed   : > { %2061 = vst [vmem:[%s3855_s8 + $0x40] sm:$0xff] %v1934_v32  ;;  %2077 = vst [vmem:[%s3855_s8 + $0xc0] sm:$0xff] %v2014_v58 }
 0x313   : > { %v2440_v51 = vpop.f32.mrb[10].mxu0  ;;  %v2464_v13 = vpop.f32.mrb[10].mxu1 }
 0x314   : > { %2064 = vst [vmem:[%s3855_s8 + $0x58] sm:$0xff] %v2440_v51  ;;  %2080 = vst [vmem:[%s3855_s8 + $0xd8] sm:$0xff] %v2464_v13  ;;  %v1944_v11 = vpop.f32.mrb[11].mxu0  ;;  %v2024_v3 = vpop.f32.mrb[11].mxu1 }
 0x315   : > { %2063 = vst [vmem:[%s3855_s8 + $0x50] sm:$0xff] %v1944_v11  ;;  %2079 = vst [vmem:[%s3855_s8 + $0xd0] sm:$0xff] %v2024_v3 }
 0x33b   : > { %v2443_v63 = vpop.f32.mrb[12].mxu0  ;;  %v2467_v1 = vpop.f32.mrb[12].mxu1 }
 0x33c   : > { %2066 = vst [vmem:[%s3855_s8 + $0x68] sm:$0xff] %v2443_v63  ;;  %2082 = vst [vmem:[%s3855_s8 + $0xe8] sm:$0xff] %v2467_v1  ;;  %v1954_v19 = vpop.f32.mrb[13].mxu0  ;;  %v2034_v28 = vpop.f32.mrb[13].mxu1 }
 0x33d   : > { %2065 = vst [vmem:[%s3855_s8 + $0x60] sm:$0xff] %v1954_v19  ;;  %2081 = vst [vmem:[%s3855_s8 + $0xe0] sm:$0xff] %v2034_v28 }
 0x357   : > { %v2446_v57 = vpop.f32.mrb[14].mxu0  ;;  %v2470_v52 = vpop.f32.mrb[14].mxu1 }
 0x358   : > { %2068 = vst [vmem:[%s3855_s8 + $0x78] sm:$0xff] %v2446_v57  ;;  %2084 = vst [vmem:[%s3855_s8 + $0xf8] sm:$0xff] %v2470_v52  ;;  %v1964_v17 = vpop.f32.mrb[15].mxu0  ;;  %v2044_v54 = vpop.f32.mrb[15].mxu1 }
 0x359   : > { %2067 = vst [vmem:[%s3855_s8 + $0x70] sm:$0xff] %v1964_v17  ;;  %2083 = vst [vmem:[%s3855_s8 + $0xf0] sm:$0xff] %v2044_v54 }
 0x35a PF: > { %s12_s9 = sadd.s32 1, %s2508_s9  }
 0x35b   : > { %p9_p4 = scmp.ge.s32.totalorder %s12_s9, 4  }
 0x35d   :  { %11 = sbr.rel (!%p9_p4) target bundleno = 1 (0x1), region = 60 }

</bundles_post_ra>
